<compile_context>
chip_gen: v5e
topology: v5e:2x2
jax: 0.10.0
libtpu: 0.0.40
codegen_flags: <defaults>
</compile_context>

<pallas_src>
import functools

import jax
import jax.numpy as jnp
import numpy as np
from jax.experimental import pallas as pl
from jax.experimental.pallas import tpu as pltpu

# ----------------------------- config ---------------------------------------
NUM_PATCHES = 8          # original: 24
EMBED_DIM = 32           # original: 1000
NUM_HEADS = 4            # original: 12
DEPTH = 2                # original: 12
MLP_RATIO = 4
NUM_CLASSES = 2
LN_EPS = 1e-5            # torch.nn.LayerNorm default
HEAD_DIM = EMBED_DIM // NUM_HEADS
N_TOKENS = NUM_PATCHES + 1

assert 3 * HEAD_DIM <= EMBED_DIM  # needed for the packed per-head qkv slab


# ------------------------- in-kernel math helpers ----------------------------
def _layernorm(x, gamma, beta):
    mu = jnp.mean(x, axis=-1, keepdims=True)
    var = jnp.mean((x - mu) ** 2, axis=-1, keepdims=True)
    return (x - mu) * jax.lax.rsqrt(var + LN_EPS) * gamma + beta


def _gelu(x):
    # tanh-approximation GELU: tanh lowers to the EUP slot (cheap vs an erf
    # polynomial which burns ~12 VALU ops per element).
    # TODO(synk): PyTorch nn.GELU() default is erf-based; the tanh approximation
    # differs by <~1e-3 absolute, acceptable for this forward pass.
    return 0.5 * x * (1.0 + jnp.tanh(0.7978845608028654 * (x + 0.044715 * x * x * x)))


# ------------------------------- fused kernel --------------------------------
def setmil_kernel(x_ref, attnw_ref, wfc1_ref, wfc2_ref, vec_ref, misc_ref,
                  out_ref, tok_ref, *, depth, num_heads, head_dim, num_classes):
    """Entire SETMIL forward: token assembly + DEPTH pre-norm blocks +
    final LayerNorm(CLS) + classification head.

    Slab layouts (built in prepare_kernel_params):
      attnw_ref : (DEPTH, H, D+hd, D)  rows 0:D = per-head [wq*scale|wk|wv]
                                       (lanes 0:3*hd), rows D: = per-head wproj
      wfc1_ref  : (DEPTH, D, 4D)
      wfc2_ref  : (DEPTH, 4D, D)
      vec_ref   : (DEPTH, 8, 4D) rows: ln1_g, ln1_b, ln2_g, ln2_b, b_proj,
                                       b_fc2, b_fc1, <pad>
      misc_ref  : (N + D + 3, D) rows 0:N  = token base (cls+pos0; pos1..)
                                 rows N:N+D = w_head (lanes 0:num_classes)
                                 row  N+D   = norm_g, N+D+1 = norm_b,
                                 N+D+2 = b_head (lanes 0:num_classes)
    """
    n_tok, D = tok_ref.shape
    hd = head_dim

    # ---- token assembly: [cls; x] + pos_embed (row 0 precomputed at prep) ----
    tok_ref[0:1, :] = misc_ref[0:1, :]
    tok_ref[1:, :] = misc_ref[1:n_tok, :] + x_ref[...]
    x = tok_ref[...]                                        # (N, D)

    for d in range(depth):                                  # static unroll
        last = (d == depth - 1)

        vecs = vec_ref[d]                                   # (8, 4D)
        ln1g, ln1b = vecs[0:1, 0:D], vecs[1:2, 0:D]
        ln2g, ln2b = vecs[2:3, 0:D], vecs[3:4, 0:D]
        bproj, bfc2 = vecs[4:5, 0:D], vecs[5:6, 0:D]
        bfc1 = vecs[6:7, :]

        aw = attnw_ref[d]                                   # (H, D+hd, D)
        wqkv = aw[:, 0:D, 0:3 * hd]                         # (H, D, 3hd)
        wproj = aw[:, D:, :]                                # (H, hd, D)

        # -------- attention branch: x + Proj(MHSA(LN1(x))) --------------------
        h = _layernorm(x, ln1g, ln1b)                       # (N, D)
        hb = jnp.broadcast_to(h[None, :, :], (num_heads,) + h.shape)
        # Single fused per-head QKV projection; contraction dim is the RHS
        # second-to-last axis -> canonical batched MXU matmul, no transposes.
        qkv = jnp.einsum('hnd,hdf->hnf', hb, wqkv,
                         preferred_element_type=jnp.float32)  # (H, N, 3hd)
        k = qkv[:, :, hd:2 * hd]
        v = qkv[:, :, 2 * hd:3 * hd]
        # Last block: only the CLS query row feeds the output -> drop the rest.
        q = qkv[:, 0:1, 0:hd] if last else qkv[:, :, 0:hd]   # (H, Nq, hd)

        s = jnp.einsum('hqe,hke->hqk', q, k,
                       preferred_element_type=jnp.float32)   # (H, Nq, N)
        s = s - jnp.max(s, axis=-1, keepdims=True)
        p = jnp.exp(s)
        # TODO(synk): approx reciprocal (~2^-12 rel err) instead of exact divide.
        p = p * pl.reciprocal(jnp.sum(p, axis=-1, keepdims=True), approx=True)
        o = jnp.einsum('hqk,hke->hqe', p, v,
                       preferred_element_type=jnp.float32)   # (H, Nq, hd)
        # Head-combine folded into per-head slices of the output projection:
        #   concat_h(o_h) @ Wproj == sum_h  o_h @ Wproj[h*hd:(h+1)*hd, :]
        attn = jnp.sum(jnp.einsum('hqe,hed->hqd', o, wproj,
                                  preferred_element_type=jnp.float32), axis=0)
        xr = (x[0:1, :] if last else x) + attn + bproj       # (Nq, D)

        # -------- MLP branch: x + FC2(GELU(FC1(LN2(x)))) ----------------------
        h2 = _layernorm(xr, ln2g, ln2b)
        h2 = jnp.dot(h2, wfc1_ref[d], preferred_element_type=jnp.float32) + bfc1
        h2 = _gelu(h2)
        h2 = jnp.dot(h2, wfc2_ref[d], preferred_element_type=jnp.float32) + bfc2
        x = xr + h2                                          # (Nq, D)

    # -------- final LayerNorm on the CLS row only + classification head ------
    normg = misc_ref[n_tok + D:n_tok + D + 1, :]
    normb = misc_ref[n_tok + D + 1:n_tok + D + 2, :]
    whead = misc_ref[n_tok:n_tok + D, 0:num_classes]         # (D, num_classes)
    bhead = misc_ref[n_tok + D + 2:n_tok + D + 3, 0:num_classes]
    cls = _layernorm(x[0:1, :], normg, normb)                # (1, D)
    out_ref[...] = (jnp.dot(cls, whead, preferred_element_type=jnp.float32)
                    + bhead)


# ------------------------------ wrapper ---------------------------------------
_VMEM = pl.BlockSpec(memory_space=pltpu.MemorySpace.VMEM)


def setmil_forward(x, kp):
    """x: (NUM_PATCHES, EMBED_DIM) float32 -> logits (1, NUM_CLASSES)."""
    kernel = functools.partial(setmil_kernel, depth=DEPTH, num_heads=NUM_HEADS,
                               head_dim=HEAD_DIM, num_classes=NUM_CLASSES)
    return pl.pallas_call(
        kernel,
        out_shape=jax.ShapeDtypeStruct((1, NUM_CLASSES), jnp.float32),
        in_specs=[_VMEM] * 6,
        out_specs=_VMEM,
        scratch_shapes=[pltpu.VMEM((N_TOKENS, EMBED_DIM), jnp.float32)],
    )(x, kp["attn_w"], kp["w_fc1"], kp["w_fc2"], kp["vec"], kp["misc"])


# ----------------------------- parameter init --------------------------------
def get_sinusoid_encoding(n_position, d_hid):
    pos = np.arange(n_position, dtype=np.float64)[:, None]
    div = np.power(10000.0, 2.0 * (np.arange(d_hid) // 2) / d_hid)[None, :]
    table = pos / div
    table[:, 0::2] = np.sin(table[:, 0::2])
    table[:, 1::2] = np.cos(table[:, 1::2])
    return jnp.asarray(table, dtype=jnp.float32)             # (n_position, d_hid)


def init_params(key):
    """Parameters in PyTorch-equivalent layout: Linear weight (in, out), y = x@W+b."""
    D, H = EMBED_DIM, MLP_RATIO * EMBED_DIM
    keys = jax.random.split(key, 4 * DEPTH + 2)

    def tn(k, shape):   # trunc_normal_(std=0.02): std << trunc range -> plain normal ok
        return jax.random.normal(k, shape, jnp.float32) * 0.02

    blocks = []
    for d in range(DEPTH):
        k0, k1, k2, k3 = keys[4 * d:4 * d + 4]
        blocks.append(dict(
            ln1_g=jnp.ones((1, D), jnp.float32),  ln1_b=jnp.zeros((1, D), jnp.float32),
            w_qkv=tn(k0, (D, 3 * D)),                               # qkv_bias=False
            w_proj=tn(k1, (D, D)),  b_proj=jnp.zeros((1, D), jnp.float32),
            ln2_g=jnp.ones((1, D), jnp.float32),  ln2_b=jnp.zeros((1, D), jnp.float32),
            w_fc1=tn(k2, (D, H)),  b_fc1=jnp.zeros((1, H), jnp.float32),
            w_fc2=tn(k3, (H, D)),  b_fc2=jnp.zeros((1, D), jnp.float32),
        ))

    return dict(
        cls_token=tn(keys[-2], (1, D)),
        pos_embed=get_sinusoid_encoding(N_TOKENS, D),
        blocks=blocks,
        norm_g=jnp.ones((1, D), jnp.float32),
        norm_b=jnp.zeros((1, D), jnp.float32),
        w_head=tn(keys[-1], (D, NUM_CLASSES)),
        b_head=jnp.zeros((1, NUM_CLASSES), jnp.float32),
    )


def prepare_kernel_params(params):
    """Restructure PyTorch-layout params into the fused kernel's slab layout:
       * per-head q/k/v weights packed (H, D, 3*hd) with the 1/sqrt(hd) scale
         folded into the Q columns (torch column ordering reshape(.,3,H,hd)),
       * per-head output-projection slices appended below the qkv block,
       * all per-block (1,D)/(1,4D) vectors packed into one (DEPTH, 8, 4D) slab,
       * token base (cls+pos0; pos1..), final-norm and head params packed into
         one misc slab."""
    D, H, hd = EMBED_DIM, NUM_HEADS, HEAD_DIM
    MLP_H = MLP_RATIO * EMBED_DIM
    scale = float(hd) ** -0.5
    blocks = params["blocks"]

    # ---- attention weight slab: (DEPTH, H, D+hd, D) --------------------------
    attn_slabs = []
    for bp in blocks:
        wq = bp["w_qkv"][:, 0 * D:1 * D] * scale      # scale folded into Q
        wk = bp["w_qkv"][:, 1 * D:2 * D]
        wv = bp["w_qkv"][:, 2 * D:3 * D]
        heads = []
        for h in range(H):
            sl = slice(h * hd, (h + 1) * hd)
            wqkv_h = jnp.concatenate([wq[:, sl], wk[:, sl], wv[:, sl]], axis=1)  # (D, 3hd)
            wqkv_h = jnp.pad(wqkv_h, ((0, 0), (0, D - 3 * hd)))                  # (D, D)
            wproj_h = bp["w_proj"][h * hd:(h + 1) * hd, :]                       # (hd, D)
            heads.append(jnp.concatenate([wqkv_h, wproj_h], axis=0))             # (D+hd, D)
        attn_slabs.append(jnp.stack(heads))
    attn_w = jnp.stack(attn_slabs)                                               # (DEPTH,H,D+hd,D)

    # ---- per-block vector slab: (DEPTH, 8, MLP_H) -----------------------------
    def row(v):
        v = v.reshape(1, -1)
        return jnp.pad(v, ((0, 0), (0, MLP_H - v.shape[1])))

    vec = jnp.stack([
        jnp.concatenate([row(bp["ln1_g"]), row(bp["ln1_b"]),
                         row(bp["ln2_g"]), row(bp["ln2_b"]),
                         row(bp["b_proj"]), row(bp["b_fc2"]),
                         row(bp["b_fc1"]), jnp.zeros((1, MLP_H), jnp.float32)],
                        axis=0)
        for bp in blocks])                                                        # (DEPTH,8,MLP_H)

    # ---- MLP weight slabs -----------------------------------------------------
    w_fc1 = jnp.stack([bp["w_fc1"] for bp in blocks])                             # (DEPTH,D,4D)
    w_fc2 = jnp.stack([bp["w_fc2"] for bp in blocks])                             # (DEPTH,4D,D)

    # ---- misc slab: token base + head + final norm ----------------------------
    base = (jnp.concatenate([params["cls_token"],
                             jnp.zeros((NUM_PATCHES, D), jnp.float32)], axis=0)
            + params["pos_embed"])                                                # (N, D)
    whead_p = jnp.pad(params["w_head"], ((0, 0), (0, D - NUM_CLASSES)))           # (D, D)
    bhead_p = jnp.pad(params["b_head"], ((0, 0), (0, D - NUM_CLASSES)))           # (1, D)
    misc = jnp.concatenate([base, whead_p, params["norm_g"], params["norm_b"],
                            bhead_p], axis=0)                                     # (N+D+3, D)

    return dict(attn_w=attn_w, vec=vec, w_fc1=w_fc1, w_fc2=w_fc2, misc=misc)


# ---------------------------------- main --------------------------------------
if __name__ == "__main__":
    root = jax.random.PRNGKey(0)
    k_x, k_p = jax.random.split(root)

    x = jax.random.normal(k_x, (NUM_PATCHES, EMBED_DIM), jnp.float32)
    params = init_params(k_p)
    kparams = prepare_kernel_params(params)

    fwd = jax.jit(setmil_forward)
    logits = jax.block_until_ready(fwd(x, kparams))

    assert logits.shape == (1, NUM_CLASSES), logits.shape
    assert bool(jnp.all(jnp.isfinite(logits)))
    print("KERNEL_OK")
</pallas_src>

<mosaic_0001>
module attributes {stable_mosaic.version = 11 : i64} {
  func.func @setmil_kernel(%arg0: memref<8x32xf32, #tpu.memory_space<vmem>>, %arg1: memref<2x4x40x32xf32, #tpu.memory_space<vmem>>, %arg2: memref<2x32x128xf32, #tpu.memory_space<vmem>>, %arg3: memref<2x128x32xf32, #tpu.memory_space<vmem>>, %arg4: memref<2x8x128xf32, #tpu.memory_space<vmem>>, %arg5: memref<44x32xf32, #tpu.memory_space<vmem>>, %arg6: memref<1x2xf32, #tpu.memory_space<vmem>>, %arg7: memref<9x32xf32, #tpu.memory_space<vmem>>) attributes {dimension_semantics = [], scalar_prefetch = 0 : i64, scratch_operands = 1 : i64, tpu.core_type = #tpu.core_type<tc>} {
    %c0 = arith.constant 0 : index
    %c0_0 = arith.constant 0 : index
    %0 = vector.load %arg5[%c0, %c0_0] : memref<44x32xf32, #tpu.memory_space<vmem>>, vector<1x32xf32>
    %c0_1 = arith.constant 0 : index
    %c0_2 = arith.constant 0 : index
    %1 = vector.load %arg7[%c0_1, %c0_2] : memref<9x32xf32, #tpu.memory_space<vmem>>, vector<1x32xf32>
    tpu.vector_store %arg7[%c0_1, %c0_2], %0 {strides = array<i32>} : memref<9x32xf32, #tpu.memory_space<vmem>>, vector<1x32xf32>,
    %c1 = arith.constant 1 : index
    %c0_3 = arith.constant 0 : index
    %2 = vector.load %arg5[%c1, %c0_3] : memref<44x32xf32, #tpu.memory_space<vmem>>, vector<8x32xf32>
    %c0_4 = arith.constant 0 : index
    %c0_5 = arith.constant 0 : index
    %3 = vector.load %arg0[%c0_4, %c0_5] : memref<8x32xf32, #tpu.memory_space<vmem>>, vector<8x32xf32>
    %4 = arith.addf %2, %3 : vector<8x32xf32>
    %c1_6 = arith.constant 1 : index
    %c0_7 = arith.constant 0 : index
    %5 = vector.load %arg7[%c1_6, %c0_7] : memref<9x32xf32, #tpu.memory_space<vmem>>, vector<8x32xf32>
    tpu.vector_store %arg7[%c1_6, %c0_7], %4 {strides = array<i32>} : memref<9x32xf32, #tpu.memory_space<vmem>>, vector<8x32xf32>,
    %c0_8 = arith.constant 0 : index
    %c0_9 = arith.constant 0 : index
    %6 = vector.load %arg7[%c0_8, %c0_9] : memref<9x32xf32, #tpu.memory_space<vmem>>, vector<9x32xf32>
    %c0_10 = arith.constant 0 : index
    %c0_11 = arith.constant 0 : index
    %c0_12 = arith.constant 0 : index
    %7 = vector.load %arg4[%c0_10, %c0_11, %c0_12] : memref<2x8x128xf32, #tpu.memory_space<vmem>>, vector<1x8x128xf32>
    %8 = vector.shape_cast %7 : vector<1x8x128xf32> to vector<8x128xf32>
    %9 = vector.extract_strided_slice %8 {offsets = [0, 0], sizes = [1, 32], strides = [1, 1]} : vector<8x128xf32> to vector<1x32xf32>
    %10 = vector.extract_strided_slice %8 {offsets = [1, 0], sizes = [1, 32], strides = [1, 1]} : vector<8x128xf32> to vector<1x32xf32>
    %11 = vector.extract_strided_slice %8 {offsets = [2, 0], sizes = [1, 32], strides = [1, 1]} : vector<8x128xf32> to vector<1x32xf32>
    %12 = vector.extract_strided_slice %8 {offsets = [3, 0], sizes = [1, 32], strides = [1, 1]} : vector<8x128xf32> to vector<1x32xf32>
    %13 = vector.extract_strided_slice %8 {offsets = [4, 0], sizes = [1, 32], strides = [1, 1]} : vector<8x128xf32> to vector<1x32xf32>
    %14 = vector.extract_strided_slice %8 {offsets = [5, 0], sizes = [1, 32], strides = [1, 1]} : vector<8x128xf32> to vector<1x32xf32>
    %15 = vector.extract_strided_slice %8 {offsets = [6, 0], sizes = [1, 128], strides = [1, 1]} : vector<8x128xf32> to vector<1x128xf32>
    %c0_13 = arith.constant 0 : index
    %c0_14 = arith.constant 0 : index
    %c0_15 = arith.constant 0 : index
    %c0_16 = arith.constant 0 : index
    %16 = vector.load %arg1[%c0_13, %c0_14, %c0_15, %c0_16] : memref<2x4x40x32xf32, #tpu.memory_space<vmem>>, vector<1x4x40x32xf32>
    %17 = vector.shape_cast %16 : vector<1x4x40x32xf32> to vector<4x40x32xf32>
    %18 = vector.extract_strided_slice %17 {offsets = [0, 0, 0], sizes = [4, 32, 24], strides = [1, 1, 1]} : vector<4x40x32xf32> to vector<4x32x24xf32>
    %19 = vector.extract_strided_slice %17 {offsets = [0, 32, 0], sizes = [4, 8, 32], strides = [1, 1, 1]} : vector<4x40x32xf32> to vector<4x8x32xf32>
    %cst = arith.constant dense<0.000000e+00> : vector<9xf32>
    %20 = vector.multi_reduction <add>, %6, %cst [1] : vector<9x32xf32> to vector<9xf32>
    %21 = vector.shape_cast %20 : vector<9xf32> to vector<9x1xf32>
    %cst_17 = arith.constant 3.200000e+01 : f32
    %22 = vector.broadcast %cst_17 : f32 to vector<9x1xf32>
    %23 = arith.divf %21, %22 : vector<9x1xf32>
    %24 = vector.broadcast %23 : vector<9x1xf32> to vector<9x32xf32>
    %25 = arith.subf %6, %24 : vector<9x32xf32>
    %26 = arith.mulf %25, %25 : vector<9x32xf32>
    %cst_18 = arith.constant dense<0.000000e+00> : vector<9xf32>
    %27 = vector.multi_reduction <add>, %26, %cst_18 [1] : vector<9x32xf32> to vector<9xf32>
    %28 = vector.shape_cast %27 : vector<9xf32> to vector<9x1xf32>
    %cst_19 = arith.constant 3.200000e+01 : f32
    %29 = vector.broadcast %cst_19 : f32 to vector<9x1xf32>
    %30 = arith.divf %28, %29 : vector<9x1xf32>
    %31 = vector.broadcast %23 : vector<9x1xf32> to vector<9x32xf32>
    %32 = arith.subf %6, %31 : vector<9x32xf32>
    %cst_20 = arith.constant 9.99999974E-6 : f32
    %33 = vector.broadcast %cst_20 : f32 to vector<9x1xf32>
    %34 = arith.addf %30, %33 : vector<9x1xf32>
    %35 = math.rsqrt %34 : vector<9x1xf32>
    %36 = vector.broadcast %35 : vector<9x1xf32> to vector<9x32xf32>
    %37 = arith.mulf %32, %36 : vector<9x32xf32>
    %38 = vector.broadcast %9 : vector<1x32xf32> to vector<9x32xf32>
    %39 = arith.mulf %37, %38 : vector<9x32xf32>
    %40 = vector.broadcast %10 : vector<1x32xf32> to vector<9x32xf32>
    %41 = arith.addf %39, %40 : vector<9x32xf32>
    %42 = vector.shape_cast %41 : vector<9x32xf32> to vector<1x9x32xf32>
    %43 = vector.shape_cast %42 : vector<1x9x32xf32> to vector<1x9x32xf32>
    %44 = vector.broadcast %43 : vector<1x9x32xf32> to vector<4x9x32xf32>
    "tpu.trace_start"() <{level = 10 : i32, message = "hnd,hdf->hnf"}> : () -> ()
    %cst_21 = arith.constant dense<0.000000e+00> : vector<4x9x24xf32>
    %45 = tpu.matmul %44, %18, %cst_21 {dimension_numbers = #tpu.dot_dimension_numbers<[2], [1], [1], [2], [0, 0, 0, 1, 1, 2], [0], [0]>} : vector<4x9x32xf32>, vector<4x32x24xf32>, vector<4x9x24xf32> -> vector<4x9x24xf32>
    "tpu.trace_stop"() : () -> ()
    %46 = vector.extract_strided_slice %45 {offsets = [0, 0, 8], sizes = [4, 9, 8], strides = [1, 1, 1]} : vector<4x9x24xf32> to vector<4x9x8xf32>
    %47 = vector.extract_strided_slice %45 {offsets = [0, 0, 16], sizes = [4, 9, 8], strides = [1, 1, 1]} : vector<4x9x24xf32> to vector<4x9x8xf32>
    %48 = vector.extract_strided_slice %45 {offsets = [0, 0, 0], sizes = [4, 9, 8], strides = [1, 1, 1]} : vector<4x9x24xf32> to vector<4x9x8xf32>
    "tpu.trace_start"() <{level = 10 : i32, message = "hqe,hke->hqk"}> : () -> ()
    %cst_22 = arith.constant dense<0.000000e+00> : vector<4x9x9xf32>
    %49 = tpu.matmul %48, %46, %cst_22 {dimension_numbers = #tpu.dot_dimension_numbers<[2], [2], [1], [1], [0, 0, 0, 1, 1, 1], [0], [0]>} : vector<4x9x8xf32>, vector<4x9x8xf32>, vector<4x9x9xf32> -> vector<4x9x9xf32>
    "tpu.trace_stop"() : () -> ()
    %cst_23 = arith.constant dense<0xFF800000> : vector<4x9xf32>
    %50 = vector.multi_reduction <maximumf>, %49, %cst_23 [2] : vector<4x9x9xf32> to vector<4x9xf32>
    %51 = vector.shape_cast %50 : vector<4x9xf32> to vector<4x9x1xf32>
    %52 = vector.broadcast %51 : vector<4x9x1xf32> to vector<4x9x9xf32>
    %53 = arith.subf %49, %52 : vector<4x9x9xf32>
    %54 = math.exp %53 : vector<4x9x9xf32>
    %cst_24 = arith.constant dense<0.000000e+00> : vector<4x9xf32>
    %55 = vector.multi_reduction <add>, %54, %cst_24 [2] : vector<4x9x9xf32> to vector<4x9xf32>
    %56 = vector.shape_cast %55 : vector<4x9xf32> to vector<4x9x1xf32>
    %57 = tpu.reciprocal %56 {approx = true} : vector<4x9x1xf32> -> vector<4x9x1xf32>
    %58 = vector.broadcast %57 : vector<4x9x1xf32> to vector<4x9x9xf32>
    %59 = arith.mulf %54, %58 : vector<4x9x9xf32>
    "tpu.trace_start"() <{level = 10 : i32, message = "hqk,hke->hqe"}> : () -> ()
    %cst_25 = arith.constant dense<0.000000e+00> : vector<4x9x8xf32>
    %60 = tpu.matmul %59, %47, %cst_25 {dimension_numbers = #tpu.dot_dimension_numbers<[2], [1], [1], [2], [0, 0, 0, 1, 1, 2], [0], [0]>} : vector<4x9x9xf32>, vector<4x9x8xf32>, vector<4x9x8xf32> -> vector<4x9x8xf32>
    "tpu.trace_stop"() : () -> ()
    "tpu.trace_start"() <{level = 10 : i32, message = "hqe,hed->hqd"}> : () -> ()
    %cst_26 = arith.constant dense<0.000000e+00> : vector<4x9x32xf32>
    %61 = tpu.matmul %60, %19, %cst_26 {dimension_numbers = #tpu.dot_dimension_numbers<[2], [1], [1], [2], [0, 0, 0, 1, 1, 2], [0], [0]>} : vector<4x9x8xf32>, vector<4x8x32xf32>, vector<4x9x32xf32> -> vector<4x9x32xf32>
    "tpu.trace_stop"() : () -> ()
    %cst_27 = arith.constant dense<0.000000e+00> : vector<9x32xf32>
    %62 = vector.multi_reduction <add>, %61, %cst_27 [0] : vector<4x9x32xf32> to vector<9x32xf32>
    %63 = arith.addf %6, %62 : vector<9x32xf32>
    %64 = vector.broadcast %13 : vector<1x32xf32> to vector<9x32xf32>
    %65 = arith.addf %63, %64 : vector<9x32xf32>
    %cst_28 = arith.constant dense<0.000000e+00> : vector<9xf32>
    %66 = vector.multi_reduction <add>, %65, %cst_28 [1] : vector<9x32xf32> to vector<9xf32>
    %67 = vector.shape_cast %66 : vector<9xf32> to vector<9x1xf32>
    %cst_29 = arith.constant 3.200000e+01 : f32
    %68 = vector.broadcast %cst_29 : f32 to vector<9x1xf32>
    %69 = arith.divf %67, %68 : vector<9x1xf32>
    %70 = vector.broadcast %69 : vector<9x1xf32> to vector<9x32xf32>
    %71 = arith.subf %65, %70 : vector<9x32xf32>
    %72 = arith.mulf %71, %71 : vector<9x32xf32>
    %cst_30 = arith.constant dense<0.000000e+00> : vector<9xf32>
    %73 = vector.multi_reduction <add>, %72, %cst_30 [1] : vector<9x32xf32> to vector<9xf32>
    %74 = vector.shape_cast %73 : vector<9xf32> to vector<9x1xf32>
    %cst_31 = arith.constant 3.200000e+01 : f32
    %75 = vector.broadcast %cst_31 : f32 to vector<9x1xf32>
    %76 = arith.divf %74, %75 : vector<9x1xf32>
    %77 = vector.broadcast %69 : vector<9x1xf32> to vector<9x32xf32>
    %78 = arith.subf %65, %77 : vector<9x32xf32>
    %cst_32 = arith.constant 9.99999974E-6 : f32
    %79 = vector.broadcast %cst_32 : f32 to vector<9x1xf32>
    %80 = arith.addf %76, %79 : vector<9x1xf32>
    %81 = math.rsqrt %80 : vector<9x1xf32>
    %82 = vector.broadcast %81 : vector<9x1xf32> to vector<9x32xf32>
    %83 = arith.mulf %78, %82 : vector<9x32xf32>
    %84 = vector.broadcast %11 : vector<1x32xf32> to vector<9x32xf32>
    %85 = arith.mulf %83, %84 : vector<9x32xf32>
    %86 = vector.broadcast %12 : vector<1x32xf32> to vector<9x32xf32>
    %87 = arith.addf %85, %86 : vector<9x32xf32>
    %c0_33 = arith.constant 0 : index
    %c0_34 = arith.constant 0 : index
    %c0_35 = arith.constant 0 : index
    %88 = vector.load %arg2[%c0_33, %c0_34, %c0_35] : memref<2x32x128xf32, #tpu.memory_space<vmem>>, vector<1x32x128xf32>
    %89 = vector.shape_cast %88 : vector<1x32x128xf32> to vector<32x128xf32>
    %cst_36 = arith.constant dense<0.000000e+00> : vector<9x128xf32>
    %90 = tpu.matmul %87, %89, %cst_36 {dimension_numbers = #tpu.dot_dimension_numbers<[1], [0], [0], [1], [0, 0, 1, 1], [], []>} : vector<9x32xf32>, vector<32x128xf32>, vector<9x128xf32> -> vector<9x128xf32>
    %91 = vector.broadcast %15 : vector<1x128xf32> to vector<9x128xf32>
    %92 = arith.addf %90, %91 : vector<9x128xf32>
    %cst_37 = arith.constant 5.000000e-01 : f32
    %93 = vector.broadcast %cst_37 : f32 to vector<9x128xf32>
    %94 = arith.mulf %93, %92 : vector<9x128xf32>
    %cst_38 = arith.constant 4.471500e-02 : f32
    %95 = vector.broadcast %cst_38 : f32 to vector<9x128xf32>
    %96 = arith.mulf %95, %92 : vector<9x128xf32>
    %97 = arith.mulf %96, %92 : vector<9x128xf32>
    %98 = arith.mulf %97, %92 : vector<9x128xf32>
    %99 = arith.addf %92, %98 : vector<9x128xf32>
    %cst_39 = arith.constant 0.797884583 : f32
    %100 = vector.broadcast %cst_39 : f32 to vector<9x128xf32>
    %101 = arith.mulf %100, %99 : vector<9x128xf32>
    %102 = math.tanh %101 : vector<9x128xf32>
    %cst_40 = arith.constant 1.000000e+00 : f32
    %103 = vector.broadcast %cst_40 : f32 to vector<9x128xf32>
    %104 = arith.addf %103, %102 : vector<9x128xf32>
    %105 = arith.mulf %94, %104 : vector<9x128xf32>
    %c0_41 = arith.constant 0 : index
    %c0_42 = arith.constant 0 : index
    %c0_43 = arith.constant 0 : index
    %106 = vector.load %arg3[%c0_41, %c0_42, %c0_43] : memref<2x128x32xf32, #tpu.memory_space<vmem>>, vector<1x128x32xf32>
    %107 = vector.shape_cast %106 : vector<1x128x32xf32> to vector<128x32xf32>
    %cst_44 = arith.constant dense<0.000000e+00> : vector<9x32xf32>
    %108 = tpu.matmul %105, %107, %cst_44 {dimension_numbers = #tpu.dot_dimension_numbers<[1], [0], [0], [1], [0, 0, 1, 1], [], []>} : vector<9x128xf32>, vector<128x32xf32>, vector<9x32xf32> -> vector<9x32xf32>
    %109 = vector.broadcast %14 : vector<1x32xf32> to vector<9x32xf32>
    %110 = arith.addf %108, %109 : vector<9x32xf32>
    %111 = arith.addf %65, %110 : vector<9x32xf32>
    %c1_45 = arith.constant 1 : index
    %c0_46 = arith.constant 0 : index
    %c0_47 = arith.constant 0 : index
    %112 = vector.load %arg4[%c1_45, %c0_46, %c0_47] : memref<2x8x128xf32, #tpu.memory_space<vmem>>, vector<1x8x128xf32>
    %113 = vector.shape_cast %112 : vector<1x8x128xf32> to vector<8x128xf32>
    %114 = vector.extract_strided_slice %113 {offsets = [0, 0], sizes = [1, 32], strides = [1, 1]} : vector<8x128xf32> to vector<1x32xf32>
    %115 = vector.extract_strided_slice %113 {offsets = [1, 0], sizes = [1, 32], strides = [1, 1]} : vector<8x128xf32> to vector<1x32xf32>
    %116 = vector.extract_strided_slice %113 {offsets = [2, 0], sizes = [1, 32], strides = [1, 1]} : vector<8x128xf32> to vector<1x32xf32>
    %117 = vector.extract_strided_slice %113 {offsets = [3, 0], sizes = [1, 32], strides = [1, 1]} : vector<8x128xf32> to vector<1x32xf32>
    %118 = vector.extract_strided_slice %113 {offsets = [4, 0], sizes = [1, 32], strides = [1, 1]} : vector<8x128xf32> to vector<1x32xf32>
    %119 = vector.extract_strided_slice %113 {offsets = [5, 0], sizes = [1, 32], strides = [1, 1]} : vector<8x128xf32> to vector<1x32xf32>
    %120 = vector.extract_strided_slice %113 {offsets = [6, 0], sizes = [1, 128], strides = [1, 1]} : vector<8x128xf32> to vector<1x128xf32>
    %c1_48 = arith.constant 1 : index
    %c0_49 = arith.constant 0 : index
    %c0_50 = arith.constant 0 : index
    %c0_51 = arith.constant 0 : index
    %121 = vector.load %arg1[%c1_48, %c0_49, %c0_50, %c0_51] : memref<2x4x40x32xf32, #tpu.memory_space<vmem>>, vector<1x4x40x32xf32>
    %122 = vector.shape_cast %121 : vector<1x4x40x32xf32> to vector<4x40x32xf32>
    %123 = vector.extract_strided_slice %122 {offsets = [0, 0, 0], sizes = [4, 32, 24], strides = [1, 1, 1]} : vector<4x40x32xf32> to vector<4x32x24xf32>
    %124 = vector.extract_strided_slice %122 {offsets = [0, 32, 0], sizes = [4, 8, 32], strides = [1, 1, 1]} : vector<4x40x32xf32> to vector<4x8x32xf32>
    %cst_52 = arith.constant dense<0.000000e+00> : vector<9xf32>
    %125 = vector.multi_reduction <add>, %111, %cst_52 [1] : vector<9x32xf32> to vector<9xf32>
    %126 = vector.shape_cast %125 : vector<9xf32> to vector<9x1xf32>
    %cst_53 = arith.constant 3.200000e+01 : f32
    %127 = vector.broadcast %cst_53 : f32 to vector<9x1xf32>
    %128 = arith.divf %126, %127 : vector<9x1xf32>
    %129 = vector.broadcast %128 : vector<9x1xf32> to vector<9x32xf32>
    %130 = arith.subf %111, %129 : vector<9x32xf32>
    %131 = arith.mulf %130, %130 : vector<9x32xf32>
    %cst_54 = arith.constant dense<0.000000e+00> : vector<9xf32>
    %132 = vector.multi_reduction <add>, %131, %cst_54 [1] : vector<9x32xf32> to vector<9xf32>
    %133 = vector.shape_cast %132 : vector<9xf32> to vector<9x1xf32>
    %cst_55 = arith.constant 3.200000e+01 : f32
    %134 = vector.broadcast %cst_55 : f32 to vector<9x1xf32>
    %135 = arith.divf %133, %134 : vector<9x1xf32>
    %136 = vector.broadcast %128 : vector<9x1xf32> to vector<9x32xf32>
    %137 = arith.subf %111, %136 : vector<9x32xf32>
    %cst_56 = arith.constant 9.99999974E-6 : f32
    %138 = vector.broadcast %cst_56 : f32 to vector<9x1xf32>
    %139 = arith.addf %135, %138 : vector<9x1xf32>
    %140 = math.rsqrt %139 : vector<9x1xf32>
    %141 = vector.broadcast %140 : vector<9x1xf32> to vector<9x32xf32>
    %142 = arith.mulf %137, %141 : vector<9x32xf32>
    %143 = vector.broadcast %114 : vector<1x32xf32> to vector<9x32xf32>
    %144 = arith.mulf %142, %143 : vector<9x32xf32>
    %145 = vector.broadcast %115 : vector<1x32xf32> to vector<9x32xf32>
    %146 = arith.addf %144, %145 : vector<9x32xf32>
    %147 = vector.shape_cast %146 : vector<9x32xf32> to vector<1x9x32xf32>
    %148 = vector.shape_cast %147 : vector<1x9x32xf32> to vector<1x9x32xf32>
    %149 = vector.broadcast %148 : vector<1x9x32xf32> to vector<4x9x32xf32>
    "tpu.trace_start"() <{level = 10 : i32, message = "hnd,hdf->hnf"}> : () -> ()
    %cst_57 = arith.constant dense<0.000000e+00> : vector<4x9x24xf32>
    %150 = tpu.matmul %149, %123, %cst_57 {dimension_numbers = #tpu.dot_dimension_numbers<[2], [1], [1], [2], [0, 0, 0, 1, 1, 2], [0], [0]>} : vector<4x9x32xf32>, vector<4x32x24xf32>, vector<4x9x24xf32> -> vector<4x9x24xf32>
    "tpu.trace_stop"() : () -> ()
    %151 = vector.extract_strided_slice %150 {offsets = [0, 0, 8], sizes = [4, 9, 8], strides = [1, 1, 1]} : vector<4x9x24xf32> to vector<4x9x8xf32>
    %152 = vector.extract_strided_slice %150 {offsets = [0, 0, 16], sizes = [4, 9, 8], strides = [1, 1, 1]} : vector<4x9x24xf32> to vector<4x9x8xf32>
    %153 = vector.extract_strided_slice %150 {offsets = [0, 0, 0], sizes = [4, 1, 8], strides = [1, 1, 1]} : vector<4x9x24xf32> to vector<4x1x8xf32>
    "tpu.trace_start"() <{level = 10 : i32, message = "hqe,hke->hqk"}> : () -> ()
    %cst_58 = arith.constant dense<0.000000e+00> : vector<4x1x9xf32>
    %154 = tpu.matmul %153, %151, %cst_58 {dimension_numbers = #tpu.dot_dimension_numbers<[2], [2], [1], [1], [0, 0, 0, 1, 1, 1], [0], [0]>} : vector<4x1x8xf32>, vector<4x9x8xf32>, vector<4x1x9xf32> -> vector<4x1x9xf32>
    "tpu.trace_stop"() : () -> ()
    %cst_59 = arith.constant dense<0xFF800000> : vector<4x1xf32>
    %155 = vector.multi_reduction <maximumf>, %154, %cst_59 [2] : vector<4x1x9xf32> to vector<4x1xf32>
    %156 = vector.shape_cast %155 : vector<4x1xf32> to vector<4x1x1xf32>
    %157 = vector.broadcast %156 : vector<4x1x1xf32> to vector<4x1x9xf32>
    %158 = arith.subf %154, %157 : vector<4x1x9xf32>
    %159 = math.exp %158 : vector<4x1x9xf32>
    %cst_60 = arith.constant dense<0.000000e+00> : vector<4x1xf32>
    %160 = vector.multi_reduction <add>, %159, %cst_60 [2] : vector<4x1x9xf32> to vector<4x1xf32>
    %161 = vector.shape_cast %160 : vector<4x1xf32> to vector<4x1x1xf32>
    %162 = tpu.reciprocal %161 {approx = true} : vector<4x1x1xf32> -> vector<4x1x1xf32>
    %163 = vector.broadcast %162 : vector<4x1x1xf32> to vector<4x1x9xf32>
    %164 = arith.mulf %159, %163 : vector<4x1x9xf32>
    "tpu.trace_start"() <{level = 10 : i32, message = "hqk,hke->hqe"}> : () -> ()
    %cst_61 = arith.constant dense<0.000000e+00> : vector<4x1x8xf32>
    %165 = tpu.matmul %164, %152, %cst_61 {dimension_numbers = #tpu.dot_dimension_numbers<[2], [1], [1], [2], [0, 0, 0, 1, 1, 2], [0], [0]>} : vector<4x1x9xf32>, vector<4x9x8xf32>, vector<4x1x8xf32> -> vector<4x1x8xf32>
    "tpu.trace_stop"() : () -> ()
    "tpu.trace_start"() <{level = 10 : i32, message = "hqe,hed->hqd"}> : () -> ()
    %cst_62 = arith.constant dense<0.000000e+00> : vector<4x1x32xf32>
    %166 = tpu.matmul %165, %124, %cst_62 {dimension_numbers = #tpu.dot_dimension_numbers<[2], [1], [1], [2], [0, 0, 0, 1, 1, 2], [0], [0]>} : vector<4x1x8xf32>, vector<4x8x32xf32>, vector<4x1x32xf32> -> vector<4x1x32xf32>
    "tpu.trace_stop"() : () -> ()
    %cst_63 = arith.constant dense<0.000000e+00> : vector<1x32xf32>
    %167 = vector.multi_reduction <add>, %166, %cst_63 [0] : vector<4x1x32xf32> to vector<1x32xf32>
    %168 = vector.extract_strided_slice %111 {offsets = [0, 0], sizes = [1, 32], strides = [1, 1]} : vector<9x32xf32> to vector<1x32xf32>
    %169 = arith.addf %168, %167 : vector<1x32xf32>
    %170 = arith.addf %169, %118 : vector<1x32xf32>
    %cst_64 = arith.constant dense<0.000000e+00> : vector<1xf32>
    %171 = vector.multi_reduction <add>, %170, %cst_64 [1] : vector<1x32xf32> to vector<1xf32>
    %172 = vector.shape_cast %171 : vector<1xf32> to vector<1x1xf32>
    %cst_65 = arith.constant 3.200000e+01 : f32
    %173 = vector.broadcast %cst_65 : f32 to vector<1x1xf32>
    %174 = arith.divf %172, %173 : vector<1x1xf32>
    %175 = vector.broadcast %174 : vector<1x1xf32> to vector<1x32xf32>
    %176 = arith.subf %170, %175 : vector<1x32xf32>
    %177 = arith.mulf %176, %176 : vector<1x32xf32>
    %cst_66 = arith.constant dense<0.000000e+00> : vector<1xf32>
    %178 = vector.multi_reduction <add>, %177, %cst_66 [1] : vector<1x32xf32> to vector<1xf32>
    %179 = vector.shape_cast %178 : vector<1xf32> to vector<1x1xf32>
    %cst_67 = arith.constant 3.200000e+01 : f32
    %180 = vector.broadcast %cst_67 : f32 to vector<1x1xf32>
    %181 = arith.divf %179, %180 : vector<1x1xf32>
    %182 = vector.broadcast %174 : vector<1x1xf32> to vector<1x32xf32>
    %183 = arith.subf %170, %182 : vector<1x32xf32>
    %cst_68 = arith.constant 9.99999974E-6 : f32
    %184 = vector.broadcast %cst_68 : f32 to vector<1x1xf32>
    %185 = arith.addf %181, %184 : vector<1x1xf32>
    %186 = math.rsqrt %185 : vector<1x1xf32>
    %187 = vector.broadcast %186 : vector<1x1xf32> to vector<1x32xf32>
    %188 = arith.mulf %183, %187 : vector<1x32xf32>
    %189 = arith.mulf %188, %116 : vector<1x32xf32>
    %190 = arith.addf %189, %117 : vector<1x32xf32>
    %c1_69 = arith.constant 1 : index
    %c0_70 = arith.constant 0 : index
    %c0_71 = arith.constant 0 : index
    %191 = vector.load %arg2[%c1_69, %c0_70, %c0_71] : memref<2x32x128xf32, #tpu.memory_space<vmem>>, vector<1x32x128xf32>
    %192 = vector.shape_cast %191 : vector<1x32x128xf32> to vector<32x128xf32>
    %cst_72 = arith.constant dense<0.000000e+00> : vector<1x128xf32>
    %193 = tpu.matmul %190, %192, %cst_72 {dimension_numbers = #tpu.dot_dimension_numbers<[1], [0], [0], [1], [0, 0, 1, 1], [], []>} : vector<1x32xf32>, vector<32x128xf32>, vector<1x128xf32> -> vector<1x128xf32>
    %194 = arith.addf %193, %120 : vector<1x128xf32>
    %cst_73 = arith.constant 5.000000e-01 : f32
    %195 = vector.broadcast %cst_73 : f32 to vector<1x128xf32>
    %196 = arith.mulf %195, %194 : vector<1x128xf32>
    %cst_74 = arith.constant 4.471500e-02 : f32
    %197 = vector.broadcast %cst_74 : f32 to vector<1x128xf32>
    %198 = arith.mulf %197, %194 : vector<1x128xf32>
    %199 = arith.mulf %198, %194 : vector<1x128xf32>
    %200 = arith.mulf %199, %194 : vector<1x128xf32>
    %201 = arith.addf %194, %200 : vector<1x128xf32>
    %cst_75 = arith.constant 0.797884583 : f32
    %202 = vector.broadcast %cst_75 : f32 to vector<1x128xf32>
    %203 = arith.mulf %202, %201 : vector<1x128xf32>
    %204 = math.tanh %203 : vector<1x128xf32>
    %cst_76 = arith.constant 1.000000e+00 : f32
    %205 = vector.broadcast %cst_76 : f32 to vector<1x128xf32>
    %206 = arith.addf %205, %204 : vector<1x128xf32>
    %207 = arith.mulf %196, %206 : vector<1x128xf32>
    %c1_77 = arith.constant 1 : index
    %c0_78 = arith.constant 0 : index
    %c0_79 = arith.constant 0 : index
    %208 = vector.load %arg3[%c1_77, %c0_78, %c0_79] : memref<2x128x32xf32, #tpu.memory_space<vmem>>, vector<1x128x32xf32>
    %209 = vector.shape_cast %208 : vector<1x128x32xf32> to vector<128x32xf32>
    %cst_80 = arith.constant dense<0.000000e+00> : vector<1x32xf32>
    %210 = tpu.matmul %207, %209, %cst_80 {dimension_numbers = #tpu.dot_dimension_numbers<[1], [0], [0], [1], [0, 0, 1, 1], [], []>} : vector<1x128xf32>, vector<128x32xf32>, vector<1x32xf32> -> vector<1x32xf32>
    %211 = arith.addf %210, %119 : vector<1x32xf32>
    %212 = arith.addf %170, %211 : vector<1x32xf32>
    %c41 = arith.constant 41 : index
    %c0_81 = arith.constant 0 : index
    %213 = vector.load %arg5[%c41, %c0_81] : memref<44x32xf32, #tpu.memory_space<vmem>>, vector<1x32xf32>
    %c42 = arith.constant 42 : index
    %c0_82 = arith.constant 0 : index
    %214 = vector.load %arg5[%c42, %c0_82] : memref<44x32xf32, #tpu.memory_space<vmem>>, vector<1x32xf32>
    %c9 = arith.constant 9 : index
    %c0_83 = arith.constant 0 : index
    %215 = vector.load %arg5[%c9, %c0_83] : memref<44x32xf32, #tpu.memory_space<vmem>>, vector<32x2xf32>
    %c43 = arith.constant 43 : index
    %c0_84 = arith.constant 0 : index
    %216 = vector.load %arg5[%c43, %c0_84] : memref<44x32xf32, #tpu.memory_space<vmem>>, vector<1x2xf32>
    %cst_85 = arith.constant dense<0.000000e+00> : vector<1xf32>
    %217 = vector.multi_reduction <add>, %212, %cst_85 [1] : vector<1x32xf32> to vector<1xf32>
    %218 = vector.shape_cast %217 : vector<1xf32> to vector<1x1xf32>
    %cst_86 = arith.constant 3.200000e+01 : f32
    %219 = vector.broadcast %cst_86 : f32 to vector<1x1xf32>
    %220 = arith.divf %218, %219 : vector<1x1xf32>
    %221 = vector.broadcast %220 : vector<1x1xf32> to vector<1x32xf32>
    %222 = arith.subf %212, %221 : vector<1x32xf32>
    %223 = arith.mulf %222, %222 : vector<1x32xf32>
    %cst_87 = arith.constant dense<0.000000e+00> : vector<1xf32>
    %224 = vector.multi_reduction <add>, %223, %cst_87 [1] : vector<1x32xf32> to vector<1xf32>
    %225 = vector.shape_cast %224 : vector<1xf32> to vector<1x1xf32>
    %cst_88 = arith.constant 3.200000e+01 : f32
    %226 = vector.broadcast %cst_88 : f32 to vector<1x1xf32>
    %227 = arith.divf %225, %226 : vector<1x1xf32>
    %228 = vector.broadcast %220 : vector<1x1xf32> to vector<1x32xf32>
    %229 = arith.subf %212, %228 : vector<1x32xf32>
    %cst_89 = arith.constant 9.99999974E-6 : f32
    %230 = vector.broadcast %cst_89 : f32 to vector<1x1xf32>
    %231 = arith.addf %227, %230 : vector<1x1xf32>
    %232 = math.rsqrt %231 : vector<1x1xf32>
    %233 = vector.broadcast %232 : vector<1x1xf32> to vector<1x32xf32>
    %234 = arith.mulf %229, %233 : vector<1x32xf32>
    %235 = arith.mulf %234, %213 : vector<1x32xf32>
    %236 = arith.addf %235, %214 : vector<1x32xf32>
    %cst_90 = arith.constant dense<0.000000e+00> : vector<1x2xf32>
    %237 = tpu.matmul %236, %215, %cst_90 {dimension_numbers = #tpu.dot_dimension_numbers<[1], [0], [0], [1], [0, 0, 1, 1], [], []>} : vector<1x32xf32>, vector<32x2xf32>, vector<1x2xf32> -> vector<1x2xf32>
    %238 = arith.addf %237, %216 : vector<1x2xf32>
    %c0_91 = arith.constant 0 : index
    %c0_92 = arith.constant 0 : index
    %239 = vector.load %arg6[%c0_91, %c0_92] : memref<1x2xf32, #tpu.memory_space<vmem>>, vector<1x2xf32>
    tpu.vector_store %arg6[%c0_91, %c0_92], %238 {strides = array<i32>} : memref<1x2xf32, #tpu.memory_space<vmem>>, vector<1x2xf32>,
    return
  }
}

</mosaic_0001>

<bundles_post_ra>
// kernel: setmil_forward.1
= control target key start
LH: loop header
LB: loop body
LE: loop exit
PB: predicated region body
PF: predicated region fallthrough
CT: control target
= control target key end

     0   :  { %vm25_vm0 = vcmask 253952   ;;  %vm30_vm1 = vcmask 261120   ;;  %s2514_s0 = inlined_call_operand.vmem [shape: f32[8,32], index: 0, kind: input, shape index: {}]   ;;  %s2515_s1 = inlined_call_operand.vmem [shape: f32[2,4,40,32], index: 1, kind: input, shape index: {}]   ;;  %s2516_s2 = inlined_call_operand.vmem [shape: f32[2,32,128], index: 2, kind: input, shape index: {}]   ;;  %s2517_s3 = inlined_call_operand.vmem [shape: f32[2,128,32], index: 3, kind: input, shape index: {}]   ;;  %s2518_s4 = inlined_call_operand.vmem [shape: f32[2,8,128], index: 4, kind: input, shape index: {}]   ;;  %s2519_s5 = inlined_call_operand.vmem [shape: f32[44,32], index: 5, kind: input, shape index: {}]   ;;  %s2520_s6 = inlined_call_operand.hbm [shape: f32[1,2], index: 6, kind: output, shape index: {}]  }
   0x1   :  { %v27_v0 = vld [vmem:[%s2519_s5 + $0x1] sm:$0xff]  ;;  %v24_v2 = vld [vmem:[%s2519_s5] sm:$0x1] }
   0x2   :  { %v28_v1 = vld [vmem:[%s2514_s0] sm:$0xff]  ;;  %26 = vst.msk [vmem:[#allocation2] sm:$0x1] %vm25_vm0, %v24_v2 }
   0x3   :  { %v29_v3 = vadd.f32 %v28_v1, %v27_v0 }
   0x4   :  { %11 = vsyncpa [#allocation4], 0  ;;  %v1866_v8 = vmov 32.0   ;;  %v43_v25 = vld [vmem:[%s2515_s1 + $0x40] sm:$0xff]  ;;  %v42_v26 = vld [vmem:[%s2515_s1 + $0x38] sm:$0xff]  ;;  %s1867_s11 = smov 120  }
   0x5   :  { %31 = vst.msk [vmem:[#allocation2 + $0x1] sm:$0xff] %vm30_vm1, %v29_v3  ;;  %1768 = vrcp.f32 %v1866_v8  ;;  %1740 = vmatpush.msra.mxu2 %v43_v25  ;;  %153 = vmatpush.msra.mxu1 %v43_v25  ;;  %v41_v27 = vld [vmem:[%s2515_s1 + $0x30] sm:$0xff]  ;;  %v40_v28 = vld [vmem:[%s2515_s1 + $0x28] sm:$0xff]  ;;  %v38_v29 = vld [vmem:[%s2515_s1 + $0x18] sm:$0xff]  ;;  %s1868_s12 = smov 112   ;;  %vm216_vm9 = vcmask 64512  }
   0x6   :  { %v48_v30 = vld [vmem:[%s2515_s1 + $0x68] sm:$0xff]  ;;  %130 = vmatpush.msra.mxu0 %v38_v29  ;;  %v37_v31 = vld [vmem:[%s2515_s1 + $0x10] sm:$0xff]  ;;  %v47_v32 = vld [vmem:[%s2515_s1 + $0x60] sm:$0xff]  ;;  %vm460_vm10 = vcmask 1040384   ;;  %vm359_vm11 = vcmask 72704   ;;  %vm363_vm12 = vcmask 65536  }
   0x7   :  { %1741 = vmatpush.msra.mxu2 %v42_v26  ;;  %154 = vmatpush.msra.mxu1 %v42_v26  ;;  %v36_v33 = vld [vmem:[%s2515_s1 + $0x8] sm:$0xff]  ;;  %v46_v35 = vld [vmem:[%s2515_s1 + $0x58] sm:$0xff]  ;;  %v35_v37 = vld [vmem:[%s2515_s1] sm:$0xff]  ;;  %s1869_s27 = smov [#allocation3]   ;;  %s1610_s30 = sshll.u32 %s2520_s6, 4  ;;  %s1611_s30 = int_to_ptr.hbm [resolvable:$true] %s1610_s30 }
   0x8   :  { %131 = vmatpush.msra.mxu0 %v37_v31  ;;  %v45_v38 = vld [vmem:[%s2515_s1 + $0x50] sm:$0xff]  ;;  %v52_v41 = vld [vmem:[%s2515_s1 + $0x88] sm:$0xff]  ;;  %v51_v43 = vld [vmem:[%s2515_s1 + $0x80] sm:$0xff]  ;;  %s1608_s28 = sshll.u32 %s1869_s27, 4  ;;  %s1609_s28 = int_to_ptr.vmem [resolvable:$true] %s1608_s28 }
   0x9   :  { %1742 = vmatpush.msra.mxu2 %v41_v27  ;;  %155 = vmatpush.msra.mxu1 %v41_v27  ;;  %v53_v40 = vld [vmem:[%s2515_s1 + $0x90] sm:$0xff]  ;;  %v50_v45 = vld [vmem:[%s2515_s1 + $0x78] sm:$0xff]  ;;  %v1993_v52 = vld [vmem:[%s2518_s4] sm:$0xff] }
   0xa   :  { %132 = vmatpush.msra.mxu0 %v36_v33  ;;  %v106_v56 = vperm.slane %v1993_v52, 0  ;;  %v109_v60 = vperm.slane %v1993_v52, 1 }
   0xb   :  { %v1769_v9 = vpop.eup %1768  ;;  %1743 = vmatpush.msra.mxu2 %v40_v28  ;;  %156 = vmatpush.msra.mxu1 %v40_v28 }
   0xc   :  { %v1916_v4 = vld [vmem:[#allocation2 + $0x8] sm:$0x1]  ;;  %v1920_v6 = vld [vmem:[#allocation2] sm:$0xff]  ;;  %v62_v10 = vmul.f32 32.0, %v1769_v9  ;;  %vm66_vm2 = vweird.f32 %v1769_v9  ;;  %133 = vmatpush.msra.mxu0 %v35_v37 }
   0xd   :  { %v58_v5 = vsel %vm25_vm0, %v1916_v4, 0.0  ;;  %v55_v7 = vsel %vm30_vm1, %v1920_v6, 0.0  ;;  %176 = vmatpush.msrb.mxu2 %v48_v30  ;;  %199 = vmatpush.msrb.mxu1 %v53_v40 }
   0xe   :  { %59 = vadd.xlane.f32.xlu0 %v58_v5  ;;  %v63_v11 = vsub.f32 1.0, %v62_v10 }
   0xf   :  { %177 = vmatpush.msrb.mxu2 %v47_v32  ;;  %200 = vmatpush.msrb.mxu1 %v52_v41 }
  0x10   :  { %v64_v12 = vmul.f32 %v1769_v9, %v63_v11 }
  0x11   :  { %178 = vmatpush.msrb.mxu2 %v46_v35  ;;  %201 = vmatpush.msrb.mxu1 %v51_v43 }
  0x12   :  { %v65_v13 = vadd.f32 %v1769_v9, %v64_v12 }
  0x13   :  { %179 = vmatpush.msrb.mxu2 %v45_v38  ;;  %202 = vmatpush.msrb.mxu1 %v50_v45 }
  0x14   :  { %v1924_v14 = vsel %vm66_vm2, %v1769_v9, %v65_v13 }
  0x16   :  { %56 = vadd.xlane.f32.xlu0 %v55_v7 }
  0x81   :  { %v60_v15 = vpop.xlane.xlu0 %59 }
  0x82   :  { %v69_v16 = vmul.f32 %v1924_v14, %v60_v15 }
  0x84   :  { %v1928_v17 = vsub.f32 %v1916_v4, %v69_v16 }
  0x86   :  { %v73_v18 = vmul.f32 %v1928_v17, %v1928_v17 }
  0x88   :  { %v77_v19 = vsel %vm25_vm0, %v73_v18, 0.0 }
  0x89   :  { %78 = vadd.xlane.f32.xlu1 %v77_v19  ;;  %v57_v20 = vpop.xlane.xlu0 %56 }
  0x8a   :  { %v68_v21 = vmul.f32 %v1924_v14, %v57_v20 }
  0x8c   :  { %v1935_v22 = vsub.f32 %v1920_v6, %v68_v21 }
  0x8e   :  { %v72_v23 = vmul.f32 %v1935_v22, %v1935_v22 }
  0x90   :  { %v74_v24 = vsel %vm30_vm1, %v72_v23, 0.0 }
  0x91   :  { %75 = vadd.xlane.f32.xlu1 %v74_v24 }
  0xfc   :  { %v79_v34 = vpop.xlane.xlu1 %78 }
  0xfd   :  { %v81_v36 = vmul.f32 %v79_v34, %v1924_v14 }
  0xff   :  { %v83_v39 = vadd.f32 1e-05, %v81_v36 }
 0x101   :  { %1770 = vrsqrt.f32 %v83_v39  ;;  %vm100_vm4 = vweird.f32 %v83_v39 }
 0x104   :  { %v76_v42 = vpop.xlane.xlu1 %75 }
 0x105   :  { %v80_v44 = vmul.f32 %v76_v42, %v1924_v14 }
 0x107   :  { %v1771_v46 = vpop.eup %1770  ;;  %v82_v47 = vadd.f32 1e-05, %v80_v44 }
 0x108   :  { %v95_v48 = vmul.f32 %v1771_v46, %v83_v39  ;;  %vm101_vm3 = vweird.f32 %v1771_v46 }
 0x109   :  { %1772 = vrsqrt.f32 %v82_v47  ;;  %vm102_vm5 = vmor %vm100_vm4, %vm101_vm3  ;;  %vm90_vm7 = vweird.f32 %v82_v47 }
 0x10a   :  { %v96_v49 = vmul.f32 %v1771_v46, %v95_v48 }
 0x10c   :  { %v97_v50 = vmul.f32 0.5, %v96_v49 }
 0x10e   :  { %v98_v51 = vsub.f32 1.5, %v97_v50 }
 0x10f   :  { %v1773_v53 = vpop.eup %1772 }
 0x110   :  { %v99_v54 = vmul.f32 %v1771_v46, %v98_v51  ;;  %v85_v55 = vmul.f32 %v1773_v53, %v82_v47  ;;  %vm91_vm6 = vweird.f32 %v1773_v53 }
 0x111   :  { %vm92_vm8 = vmor %vm90_vm7, %vm91_vm6 }
 0x112   :  { %v103_v57 = vsel %vm102_vm5, %v1771_v46, %v99_v54  ;;  %v86_v58 = vmul.f32 %v1773_v53, %v85_v55 }
 0x113   :  { %v105_v59 = vmul.f32 %v103_v57, %v1928_v17 }
 0x114   :  { %v87_v61 = vmul.f32 0.5, %v86_v58 }
 0x115   :  { %v108_v62 = vmul.f32 %v106_v56, %v105_v59 }
 0x116   :  { %v88_v63 = vsub.f32 1.5, %v87_v61 }
 0x117   :  { %v111_v0 = vadd.f32 %v109_v60, %v108_v62 }
 0x118   :  { %v89_v1 = vmul.f32 %v1773_v53, %v88_v63 }
 0x119   :  { %1622 = vmatmul.msk.f32.vlgmr.msra.gmra.mxu2 %vm30_vm1, %v111_v0 }
 0x11a   :  { %v93_v2 = vsel %vm92_vm8, %v1773_v53, %v89_v1 }
 0x11b   :  { %v104_v3 = vmul.f32 %v93_v2, %v1935_v22 }
 0x11d   :  { %v107_v5 = vmul.f32 %v106_v56, %v104_v3 }
 0x11f   :  { %v110_v7 = vadd.f32 %v109_v60, %v107_v5 }
 0x121   :  { %1619 = vmatmul.msk.f32.vlgmr.msra.gmra.mxu0 %vm30_vm1, %v110_v7  ;;  %1621 = vmatmul.msk.f32.vlgmr.msra.gmra.mxu1 %vm30_vm1, %v110_v7 }
 0x122   :  { %1623 = vmatmul.msk.f32.vlgmr.msrb.gmra.mxu2 %vm30_vm1, %v110_v7 }
 0x129   :  { %1620 = vmatmul.msk.f32.gmra.mxu0 %vm30_vm1, %v111_v0  ;;  %1625 = vmatmul.msk.f32.vlgmr.msrb.gmra.mxu1 %vm30_vm1, %v110_v7 }
 0x12a   :  { %1624 = vmatmul.msk.f32.gmra.mxu2 %vm30_vm1, %v111_v0 }
 0x131   :  { %1626 = vmatmul.msk.f32.gmra.mxu1 %vm30_vm1, %v111_v0 }
 0x19c   :  { %v2007_v8 = vpop.f32.mrf.mxu2 }
 0x19e   :  { %v2009_v9 = vpop.f32.mrf.mxu1  ;;  %v2022_v13 = vpop.f32.mrf.mxu0 }
 0x1a5   :  { %v2011_v10 = vpop.f32.mrf.mxu2 }
 0x1a6   :  { %287 = vrot.lane.b32.xlu0 %v2011_v10, %s1867_s11  ;;  %v2015_v11 = vpop.f32.mrf.mxu1  ;;  %v2026_v16 = vpop.f32.mrf.mxu0 }
 0x1a7   :  { %324 = vrot.lane.b32.xlu1 %v2015_v11, %s1867_s11  ;;  %v1748_v42 = vpack.i.bf16 %v2015_v11, %v2011_v10 }
 0x1ad   :  { %v184_v15 = vpop.f32.mrf.mxu2 }
 0x1ae   :  { %250 = vrot.lane.b32.xlu0 %v2009_v9, %s1867_s11  ;;  %v207_v12 = vpop.f32.mrf.mxu1 }
 0x1af   :  { %326 = vrot.lane.b32.xlu2 %v207_v12, %s1867_s11 }
 0x1b6   :  { %560 = vrot.lane.b32.xlu0 %v207_v12, %s1868_s12 }
 0x1b7   :  { %289 = vrot.lane.b32.xlu2 %v184_v15, %s1867_s11 }
 0x1bf   :  { %214 = vrot.lane.b32.xlu2 %v2026_v16, %s1867_s11 }
 0x1c7   :  { %252 = vrot.lane.b32.xlu2 %v2007_v8, %s1867_s11 }
 0x1cf   :  { %212 = vrot.lane.b32.xlu2 %v2022_v13, %s1867_s11 }
 0x209   :  { %v327_v17 = vpop.permute.xlu2 %326 }
 0x20a   :  { %1639 = vmatpush.xpose.msk.msra.mxu3 %vm216_vm9, %v327_v17 }
 0x211   :  { %v290_v18 = vpop.permute.xlu2 %289 }
 0x212   :  { %1635 = vmatpush.xpose.msk.msra.mxu2 %vm216_vm9, %v290_v18 }
 0x218   :  { %v288_v19 = vpop.permute.xlu0 %287 }
 0x219   :  { %1636 = vmatpush.xpose.msk.msra.mxu2 %vm216_vm9, %v288_v19  ;;  %v325_v20 = vpop.permute.xlu1 %324  ;;  %v215_v21 = vpop.permute.xlu2 %214 }
 0x21a   :  { %1627 = vmatpush.xpose.msk.msrb.mxu0 %vm216_vm9, %v215_v21  ;;  %1640 = vmatpush.xpose.msk.msra.mxu3 %vm216_vm9, %v325_v20 }
 0x21c   :  { %1637 = vmatmul.msk.f32.vlgmr.msra.gmra.mxu2 %vm216_vm9, %v2011_v10 }
 0x21d   :  { %1641 = vmatmul.msk.f32.vlgmr.msra.gmra.mxu3 %vm216_vm9, %v2015_v11 }
 0x220   :  { %v251_v22 = vpop.permute.xlu0 %250 }
 0x221   :  { %v253_v23 = vpop.permute.xlu2 %252 }
 0x222   :  { %1631 = vmatpush.xpose.msk.msra.mxu1 %vm216_vm9, %v253_v23 }
 0x224   :  { %1638 = vmatmul.msk.f32.gmra.mxu2 %vm216_vm9, %v184_v15 }
 0x225   :  { %1642 = vmatmul.msk.f32.gmra.mxu3 %vm216_vm9, %v207_v12 }
 0x226   :  { %1632 = vmatpush.xpose.msk.msra.mxu1 %vm216_vm9, %v251_v22 }
 0x228   :  { %v561_v24 = vpop.permute.xlu0 %560 }
 0x229   :  { %1652 = vmatpush.msk.msrb.mxu3 %vm460_vm10, %v561_v24  ;;  %1633 = vmatmul.msk.f32.vlgmr.msra.gmra.mxu1 %vm216_vm9, %v2009_v9  ;;  %v213_v25 = vpop.permute.xlu2 %212 }
 0x22a   :  { %1628 = vmatpush.xpose.msk.msrb.mxu0 %vm216_vm9, %v213_v25 }
 0x22d   :  { %1629 = vmatmul.msk.f32.vlgmr.msrb.gmra.mxu0 %vm216_vm9, %v2022_v13 }
 0x231   :  { %1634 = vmatmul.msk.f32.gmra.mxu1 %vm216_vm9, %v2007_v8 }
 0x235   :  { %1630 = vmatmul.msk.f32.gmra.mxu0 %vm216_vm9, %v2026_v16 }
 0x29f   :  { %v316_v27 = vpop.f32.mrf.mxu2 }
 0x2a0   :  { %v353_v26 = vpop.f32.mrf.mxu3  ;;  %v373_v41 = vsel %vm359_vm11, %v316_v27, -inf }
 0x2a1   :  { %v379_v40 = vsel %vm359_vm11, %v353_v26, -inf }
 0x2a6   :  { %v279_v28 = vpop.f32.mrf.mxu1 }
 0x2a7   :  { %v367_v29 = vsel %vm359_vm11, %v279_v28, -inf  ;;  %v2063_v34 = vpop.f32.mrf.mxu2 }
 0x2a8   :  { %v2058_v30 = vpop.f32.mrf.mxu3  ;;  %368 = vmax.xlane.f32.xlu1 %v367_v29  ;;  %v376_v37 = vsel %vm363_vm12, %v2063_v34, -inf }
 0x2a9   :  { %v382_v31 = vsel %vm363_vm12, %v2058_v30, -inf }
 0x2aa   :  { %383 = vmax.xlane.f32.xlu0 %v382_v31  ;;  %v242_v32 = vpop.f32.mrf.mxu0  ;;  %v1753_v31 = vpack.i.bf16 %v2009_v9, %v2022_v13 }
 0x2ab   :  { %v360_v33 = vsel %vm359_vm11, %v242_v32, -inf }
 0x2ac   :  { %361 = vmax.xlane.f32.xlu2 %v360_v33 }
 0x2ae   :  { %v282_v35 = vpop.f32.mrf.mxu1 }
 0x2af   :  { %v370_v36 = vsel %vm363_vm12, %v282_v35, -inf }
 0x2b0   :  { %371 = vmax.xlane.f32.xlu1 %v370_v36 }
 0x2b2   :  { %377 = vmax.xlane.f32.xlu0 %v376_v37  ;;  %v245_v38 = vpop.f32.mrf.mxu0 }
 0x2b3   :  { %v364_v39 = vsel %vm363_vm12, %v245_v38, -inf }
 0x2b4   :  { %365 = vmax.xlane.f32.xlu2 %v364_v39 }
 0x2b8   :  { %380 = vmax.xlane.f32.xlu1 %v379_v40 }
 0x2bc   :  { %374 = vmax.xlane.f32.xlu2 %v373_v41 }
 0x2d1   :  { %524 = vrot.lane.b32.xlu1 %v184_v15, %s1868_s12 }
 0x2d4   :  { %1749 = vrot.lane.b32.xlu2 %v1748_v42, %s1868_s12 }
 0x31b   :  { %v369_v43 = vpop.xlane.xlu1 %368 }
 0x31c   :  { %v387_v44 = vsub.f32 %v279_v28, %v369_v43 }
 0x31d   :  { %v384_v3 = vpop.xlane.xlu0 %383 }
 0x31e   :  { %v397_v45 = vmul.f32 1.442695, %v387_v44  ;;  %v392_v17 = vsub.f32 %v2058_v30, %v384_v3 }
 0x31f   :  { %v362_v46 = vpop.xlane.xlu2 %361 }
 0x320   :  { %1774 = vpow2.f32 %v397_v45  ;;  %v385_v47 = vsub.f32 %v242_v32, %v362_v46  ;;  %v407_v19 = vmul.f32 1.442695, %v392_v17 }
 0x322   :  { %v393_v48 = vmul.f32 1.442695, %v385_v47 }
 0x323   :  { %v372_v49 = vpop.xlane.xlu1 %371 }
 0x324   :  { %1776 = vpow2.f32 %v393_v48  ;;  %v388_v56 = vsub.f32 %v282_v35, %v372_v49 }
 0x325   :  { %v378_v20 = vpop.xlane.xlu0 %377 }
 0x326   :  { %v2075_v50 = vpop.eup %1774  ;;  %v399_v61 = vmul.f32 1.442695, %v388_v56  ;;  %v390_v22 = vsub.f32 %v2063_v34, %v378_v20 }
 0x327   :  { %v366_v51 = vpop.xlane.xlu2 %365  ;;  %v415_v53 = vsel %vm359_vm11, %v2075_v50, 0.0 }
 0x328   :  { %v386_v54 = vsub.f32 %v245_v38, %v366_v51  ;;  %416 = vadd.xlane.f32.xlu2 %v415_v53 }
 0x32a   :  { %v2079_v55 = vpop.eup %1776  ;;  %v395_v57 = vmul.f32 1.442695, %v386_v54 }
 0x32b   :  { %v381_v58 = vpop.xlane.xlu1 %380  ;;  %v409_v59 = vsel %vm359_vm11, %v2079_v55, 0.0 }
 0x32c   :  { %1778 = vpow2.f32 %v395_v57  ;;  %v391_v60 = vsub.f32 %v353_v26, %v381_v58  ;;  %410 = vadd.xlane.f32.xlu1 %v409_v59  ;;  %v403_v26 = vmul.f32 1.442695, %v390_v22 }
 0x32e   :  { %v405_v62 = vmul.f32 1.442695, %v391_v60  ;;  %v39_v60 = vld [vmem:[%s2515_s1 + $0x20] sm:$0xff] }
 0x32f   :  { %v375_v63 = vpop.xlane.xlu2 %374 }
 0x330   :  { %1780 = vpow2.f32 %v405_v62  ;;  %v389_v1 = vsub.f32 %v316_v27, %v375_v63 }
 0x331   :  { %1782 = vpow2.f32 %v399_v61  ;;  %v44_v61 = vld [vmem:[%s2515_s1 + $0x48] sm:$0xff] }
 0x332   :  { %v2083_v0 = vpop.eup %1778  ;;  %v401_v7 = vmul.f32 1.442695, %v389_v1 }
 0x333   :  { %v412_v2 = vsel %vm363_vm12, %v2083_v0, 0.0 }
 0x334   :  { %413 = vadd.xlane.f32.xlu0 %v412_v2  ;;  %1784 = vpow2.f32 %v401_v7 }
 0x335   :  { %1786 = vpow2.f32 %v407_v19 }
 0x336   :  { %v1781_v5 = vpop.eup %1780  ;;  %1788 = vpow2.f32 %v403_v26 }
 0x337   :  { %v1750_v10 = vpop.permute.xlu2 %1749  ;;  %v427_v11 = vsel %vm359_vm11, %v1781_v5, 0.0  ;;  %v2088_v12 = vpop.eup %1782 }
 0x338   :  { %428 = vadd.xlane.f32.xlu2 %v427_v11  ;;  %v1752_v15 = vunpack.i.h.bf16 %v1750_v10  ;;  %v418_v18 = vsel %vm363_vm12, %v2088_v12, 0.0  ;;  %v1751_v25 = vunpack.i.l.bf16 %v1750_v10 }
 0x33a   :  { %586 = vmatpush.msrb.mxu3 %v1752_v15  ;;  %v1785_v21 = vpop.eup %1784 }
 0x33b   :  { %v421_v24 = vsel %vm359_vm11, %v1785_v21, 0.0  ;;  %v1787_v27 = vpop.eup %1786 }
 0x33c   :  { %419 = vadd.xlane.f32.xlu0 %v418_v18  ;;  %v430_v28 = vsel %vm363_vm12, %v1787_v27, 0.0  ;;  %v1789_v29 = vpop.eup %1788 }
 0x33d   :  { %v424_v30 = vsel %vm363_vm12, %v1789_v29, 0.0 }
 0x343   :  { %v525_v23 = vpop.permute.xlu1 %524 }
 0x344   :  { %1649 = vmatpush.msk.msrb.mxu2 %vm460_vm10, %v525_v23  ;;  %422 = vadd.xlane.f32.xlu0 %v421_v24  ;;  %v726_v24 = vperm.slane %v1993_v52, 4 }
 0x345   :  { %451 = vrot.lane.b32.xlu1 %v2026_v16, %s1868_s12 }
 0x346   :  { %550 = vmatpush.msrb.mxu2 %v1751_v25 }
 0x34c   :  { %431 = vadd.xlane.f32.xlu0 %v430_v28 }
 0x350   :  { %488 = vrot.lane.b32.xlu2 %v2007_v8, %s1868_s12 }
 0x354   :  { %425 = vadd.xlane.f32.xlu0 %v424_v30 }
 0x368   :  { %1754 = vrot.lane.b32.xlu0 %v1753_v31, %s1868_s12 }
 0x39b   :  { %v417_v16 = vpop.xlane.xlu2 %416 }
 0x39f   :  { %v411_v34 = vpop.xlane.xlu1 %410 }
 0x3a7   :  { %v414_v32 = vpop.xlane.xlu0 %413 }
 0x3ab   :  { %v429_v33 = vpop.xlane.xlu2 %428 }
 0x3ac   :  { %1790 = vrcp.f32 %v429_v33 }
 0x3af   :  { %v420_v35 = vpop.xlane.xlu0 %419 }
 0x3b2   :  { %v1791_v36 = vpop.eup %1790 }
 0x3b3   :  { %v489_v37 = vpop.permute.xlu2 %488  ;;  %v447_v38 = vmul.f32 %v1791_v36, %v1781_v5 }
 0x3b4   :  { %1646 = vmatpush.msk.msrb.mxu1 %vm460_vm10, %v489_v37 }
 0x3b5   :  { %1653 = vmatmul.msk.f32.vlgmr.msrb.gmra.mxu3 %vm359_vm11, %v447_v38 }
 0x3b7   :  { %v452_v8 = vpop.permute.xlu1 %451  ;;  %v423_v39 = vpop.xlane.xlu0 %422 }
 0x3b8   :  { %1792 = vrcp.f32 %v423_v39  ;;  %1643 = vmatpush.msk.msra.mxu0 %vm460_vm10, %v452_v8 }
 0x3be   :  { %v1793_v9 = vpop.eup %1792 }
 0x3bf   :  { %v445_v13 = vmul.f32 %v1793_v9, %v1785_v21  ;;  %v432_v40 = vpop.xlane.xlu0 %431 }
 0x3c0   :  { %1794 = vrcp.f32 %v432_v40 }
 0x3c1   :  { %1650 = vmatmul.msk.f32.vlgmr.msrb.gmra.mxu2 %vm359_vm11, %v445_v13 }
 0x3c6   :  { %v1795_v41 = vpop.eup %1794 }
 0x3c7   :  { %v426_v42 = vpop.xlane.xlu0 %425  ;;  %v448_v43 = vmul.f32 %v1795_v41, %v1787_v27 }
 0x3c8   :  { %1796 = vrcp.f32 %v426_v42 }
 0x3c9   :  { %1654 = vmatmul.msk.f32.gmra.mxu3 %vm359_vm11, %v448_v43  ;;  %1798 = vrcp.f32 %v417_v16 }
 0x3ca   :  { %1800 = vrcp.f32 %v411_v34 }
 0x3cb   :  { %1802 = vrcp.f32 %v414_v32 }
 0x3cc   :  { %1804 = vrcp.f32 %v420_v35 }
 0x3ce   :  { %v1797_v44 = vpop.eup %1796 }
 0x3cf   :  { %v446_v45 = vmul.f32 %v1797_v44, %v1789_v29  ;;  %v1799_v46 = vpop.eup %1798 }
 0x3d0   :  { %v1801_v47 = vpop.eup %1800  ;;  %v443_v53 = vmul.f32 %v1799_v46, %v2075_v50  ;;  %v54_v50 = vld [vmem:[%s2515_s1 + $0x98] sm:$0xff] }
 0x3d1   :  { %1651 = vmatmul.msk.f32.gmra.mxu2 %vm359_vm11, %v446_v45  ;;  %v441_v54 = vmul.f32 %v1801_v47, %v2079_v55  ;;  %v1803_v56 = vpop.eup %1802  ;;  %702 = vmatpush.msra.mxu3 %v54_v50  ;;  %v49_v55 = vld [vmem:[%s2515_s1 + $0x70] sm:$0xff]  ;;  %v782_v46 = vld [vmem:[%s2516_s2 + $0x18] sm:$0xff] }
 0x3d2   :  { %v1805_v57 = vpop.eup %1804  ;;  %v442_v58 = vmul.f32 %v1803_v56, %v2083_v0  ;;  %673 = vmatpush.msra.mxu2 %v49_v55  ;;  %v781_v47 = vld [vmem:[%s2516_s2 + $0x10] sm:$0xff]  ;;  %v846_v56 = vld [vmem:[%s2517_s3 + $0x78] sm:$0xff]  ;;  %v843_v55 = vld [vmem:[%s2517_s3 + $0x60] sm:$0xff] }
 0x3d3   :  { %v444_v59 = vmul.f32 %v1805_v57, %v2088_v12  ;;  %v845_v57 = vld [vmem:[%s2517_s3 + $0x70] sm:$0xff] }
 0x3da   :  { %v1755_v48 = vpop.permute.xlu0 %1754 }
 0x3db   :  { %v1757_v49 = vunpack.i.h.bf16 %v1755_v48  ;;  %v1756_v51 = vunpack.i.l.bf16 %v1755_v48  ;;  %v780_v48 = vld [vmem:[%s2516_s2 + $0x8] sm:$0xff] }
 0x3dd   :  { %478 = vmatpush.msra.mxu0 %v1756_v51  ;;  %514 = vmatpush.msrb.mxu1 %v1757_v49  ;;  %v779_v49 = vld [vmem:[%s2516_s2] sm:$0xff] }
 0x3de   :  { %1644 = vmatmul.msk.f32.vlgmr.msra.gmra.mxu0 %vm359_vm11, %v441_v54  ;;  %1647 = vmatmul.msk.f32.vlgmr.msrb.gmra.mxu1 %vm359_vm11, %v443_v53 }
 0x3df   :  { %615 = vmatpush.msrb.mxu0 %v39_v60  ;;  %644 = vmatpush.msra.mxu1 %v44_v61 }
 0x3e1   :  { %802 = vmatpush.msra.mxu0 %v782_v46  ;;  %848 = vmatpush.msrb.mxu1 %v846_v56 }
 0x3e3   :  { %803 = vmatpush.msra.mxu0 %v781_v47  ;;  %849 = vmatpush.msrb.mxu1 %v845_v57 }
 0x3e5   :  { %804 = vmatpush.msra.mxu0 %v780_v48 }
 0x3e6   :  { %1645 = vmatmul.msk.f32.gmra.mxu0 %vm359_vm11, %v442_v58  ;;  %1648 = vmatmul.msk.f32.gmra.mxu1 %vm359_vm11, %v444_v59  ;;  %v844_v58 = vld [vmem:[%s2517_s3 + $0x68] sm:$0xff] }
 0x3e7   :  { %805 = vmatpush.msra.mxu0 %v779_v49  ;;  %850 = vmatpush.msrb.mxu1 %v844_v58 }
 0x3e9   :  { %851 = vmatpush.msrb.mxu1 %v843_v55 }
 0x438   :  { %v588_v62 = vpop.f32.mrf.mxu3 }
 0x439   :  { %1661 = vmatmul.msk.f32.vlgmr.msra.gmra.mxu3 %vm216_vm9, %v588_v62 }
 0x444   :  { %v552_v63 = vpop.f32.mrf.mxu2 }
 0x445   :  { %1659 = vmatmul.msk.f32.vlgmr.msra.gmra.mxu2 %vm216_vm9, %v552_v63 }
 0x44c   :  { %v591_v0 = vpop.f32.mrf.mxu3 }
 0x44d   :  { %1662 = vmatmul.msk.f32.gmra.mxu3 %vm216_vm9, %v591_v0 }
 0x454   :  { %v555_v1 = vpop.f32.mrf.mxu2 }
 0x455   :  { %1660 = vmatmul.msk.f32.gmra.mxu2 %vm216_vm9, %v555_v1 }
 0x45b   :  { %v480_v2 = vpop.f32.mrf.mxu0  ;;  %v516_v3 = vpop.f32.mrf.mxu1 }
 0x45c   :  { %1655 = vmatmul.msk.f32.vlgmr.msrb.gmra.mxu0 %vm216_vm9, %v480_v2  ;;  %1657 = vmatmul.msk.f32.vlgmr.msra.gmra.mxu1 %vm216_vm9, %v516_v3 }
 0x463   :  { %v483_v5 = vpop.f32.mrf.mxu0  ;;  %v519_v7 = vpop.f32.mrf.mxu1 }
 0x464   :  { %1656 = vmatmul.msk.f32.gmra.mxu0 %vm216_vm9, %v483_v5  ;;  %1658 = vmatmul.msk.f32.gmra.mxu1 %vm216_vm9, %v519_v7  ;;  %v773_v7 = vperm.slane %v1993_v52, 2 }
 0x4bc   :  { %v704_v18 = vpop.f32.mrf.mxu3 }
 0x4bd   :  { %v715_v22 = vsel %vm30_vm1, %v704_v18, 0.0 }
 0x4c8   :  { %v675_v10 = vpop.f32.mrf.mxu2 }
 0x4c9   :  { %v713_v20 = vsel %vm30_vm1, %v675_v10, 0.0 }
 0x4d0   :  { %v707_v31 = vpop.f32.mrf.mxu3 }
 0x4d1   :  { %v722_v36 = vsel %vm25_vm0, %v707_v31, 0.0  ;;  %v837_v31 = vld [vmem:[%s2517_s3 + $0x30] sm:$0xff] }
 0x4d8   :  { %v678_v25 = vpop.f32.mrf.mxu2 }
 0x4d9   :  { %v617_v11 = vpop.f32.mrf.mxu0  ;;  %v646_v12 = vpop.f32.mrf.mxu1  ;;  %v720_v33 = vsel %vm25_vm0, %v678_v25, 0.0 }
 0x4da   :  { %v710_v15 = vsel %vm30_vm1, %v617_v11, 0.0  ;;  %v711_v17 = vsel %vm30_vm1, %v646_v12, 0.0 }
 0x4db   :  { %v712_v19 = vadd.f32 %v711_v17, %v710_v15  ;;  %v776_v15 = vperm.slane %v1993_v52, 3 }
 0x4dd   :  { %v714_v21 = vadd.f32 %v713_v20, %v712_v19 }
 0x4df   :  { %v716_v23 = vadd.f32 %v715_v22, %v714_v21 }
 0x4e1   :  { %v620_v26 = vpop.f32.mrf.mxu0  ;;  %v649_v27 = vpop.f32.mrf.mxu1  ;;  %v724_v28 = vadd.f32 %v716_v23, %v1920_v6 }
 0x4e2   :  { %v717_v29 = vsel %vm25_vm0, %v620_v26, 0.0  ;;  %v718_v30 = vsel %vm25_vm0, %v649_v27, 0.0  ;;  %v842_v26 = vld [vmem:[%s2517_s3 + $0x58] sm:$0xff]  ;;  %v841_v27 = vld [vmem:[%s2517_s3 + $0x50] sm:$0xff] }
 0x4e3   :  { %v719_v16 = vadd.f32 %v718_v30, %v717_v29  ;;  %v2147_v32 = vadd.f32 %v726_v24, %v724_v28  ;;  %852 = vmatpush.msrb.mxu1 %v842_v26  ;;  %v840_v28 = vld [vmem:[%s2517_s3 + $0x48] sm:$0xff]  ;;  %v839_v29 = vld [vmem:[%s2517_s3 + $0x40] sm:$0xff]  ;;  %v838_v30 = vld [vmem:[%s2517_s3 + $0x38] sm:$0xff] }
 0x4e4   :  { %v1666_v26 = vld [vmem:[%s2515_s1 + $0xa0] sm:$0xff] }
 0x4e5   :  { %v721_v34 = vadd.f32 %v720_v33, %v719_v16  ;;  %v729_v35 = vsel %vm30_vm1, %v2147_v32, 0.0  ;;  %853 = vmatpush.msrb.mxu1 %v841_v27  ;;  %v836_v16 = vld [vmem:[%s2517_s3 + $0x28] sm:$0xff]  ;;  %v835_v33 = vld [vmem:[%s2517_s3 + $0x20] sm:$0xff] }
 0x4e6   :  { %730 = vadd.xlane.f32.xlu1 %v729_v35  ;;  %v833_v35 = vld [vmem:[%s2517_s3 + $0x10] sm:$0xff]  ;;  %v1671_v27 = vld [vmem:[%s2515_s1 + $0xc8] sm:$0xff] }
 0x4e7   :  { %v723_v37 = vadd.f32 %v722_v36, %v721_v34  ;;  %854 = vmatpush.msrb.mxu1 %v840_v28  ;;  %v834_v34 = vld [vmem:[%s2517_s3 + $0x18] sm:$0xff]  ;;  %v832_v36 = vld [vmem:[%s2517_s3 + $0x8] sm:$0xff]  ;;  %v1676_v28 = vld [vmem:[%s2515_s1 + $0xf0] sm:$0xff] }
 0x4e9   :  { %v725_v6 = vadd.f32 %v723_v37, %v1916_v4  ;;  %855 = vmatpush.msrb.mxu1 %v839_v29  ;;  %v831_v37 = vld [vmem:[%s2517_s3] sm:$0xff] }
 0x4eb   :  { %v2154_v38 = vadd.f32 %v726_v24, %v725_v6  ;;  %856 = vmatpush.msrb.mxu1 %v838_v30  ;;  %v783_v6 = vperm.slane %v1993_v52, 6 }
 0x4ed   :  { %v732_v8 = vsel %vm25_vm0, %v2154_v38, 0.0  ;;  %857 = vmatpush.msrb.mxu1 %v837_v31 }
 0x4ee   :  { %733 = vadd.xlane.f32.xlu2 %v732_v8 }
 0x4ef   :  { %858 = vmatpush.msrb.mxu1 %v836_v16  ;;  %v1684_v16 = vld [vmem:[%s2515_s1 + $0x130] sm:$0xff] }
 0x4f1   :  { %859 = vmatpush.msrb.mxu1 %v835_v33  ;;  %v1683_v33 = vld [vmem:[%s2515_s1 + $0x128] sm:$0xff] }
 0x4f3   :  { %860 = vmatpush.msrb.mxu1 %v834_v34 }
 0x4f5   :  { %861 = vmatpush.msrb.mxu1 %v833_v35  ;;  %v1682_v35 = vld [vmem:[%s2515_s1 + $0x120] sm:$0xff] }
 0x4f7   :  { %862 = vmatpush.msrb.mxu1 %v832_v36 }
 0x4f9   :  { %863 = vmatpush.msrb.mxu1 %v831_v37  ;;  %v1681_v37 = vld [vmem:[%s2515_s1 + $0x118] sm:$0xff] }
 0x559   :  { %v731_v39 = vpop.xlane.xlu1 %730 }
 0x55a   :  { %v735_v9 = vmul.f32 %v731_v39, %v1924_v14 }
 0x55c   :  { %v737_v13 = vsub.f32 %v2147_v32, %v735_v9 }
 0x55e   :  { %v739_v40 = vmul.f32 %v737_v13, %v737_v13 }
 0x560   :  { %v741_v41 = vsel %vm30_vm1, %v739_v40, 0.0 }
 0x561   :  { %742 = vadd.xlane.f32.xlu0 %v741_v41  ;;  %v734_v42 = vpop.xlane.xlu2 %733 }
 0x562   :  { %v736_v43 = vmul.f32 %v734_v42, %v1924_v14 }
 0x564   :  { %v738_v4 = vsub.f32 %v2154_v38, %v736_v43 }
 0x566   :  { %v740_v44 = vmul.f32 %v738_v4, %v738_v4 }
 0x568   :  { %v744_v45 = vsel %vm25_vm0, %v740_v44, 0.0 }
 0x569   :  { %745 = vadd.xlane.f32.xlu1 %v744_v45 }
 0x5d4   :  { %v743_v51 = vpop.xlane.xlu0 %742 }
 0x5d5   :  { %v747_v53 = vmul.f32 %v743_v51, %v1924_v14 }
 0x5d7   :  { %v749_v54 = vadd.f32 1e-05, %v747_v53 }
 0x5d9   :  { %1806 = vrsqrt.f32 %v749_v54  ;;  %vm757_vm14 = vweird.f32 %v749_v54 }
 0x5dc   :  { %v746_v59 = vpop.xlane.xlu1 %745 }
 0x5dd   :  { %v748_v50 = vmul.f32 %v746_v59, %v1924_v14 }
 0x5df   :  { %v1807_v60 = vpop.eup %1806  ;;  %v750_v61 = vadd.f32 1e-05, %v748_v50  ;;  %v847_v50 = vperm.slane %v1993_v52, 5 }
 0x5e0   :  { %v752_v62 = vmul.f32 %v1807_v60, %v749_v54  ;;  %vm758_vm13 = vweird.f32 %v1807_v60 }
 0x5e1   :  { %1808 = vrsqrt.f32 %v750_v61  ;;  %vm759_vm15 = vmor %vm757_vm14, %vm758_vm13  ;;  %vm767_vm3 = vweird.f32 %v750_v61 }
 0x5e2   :  { %v753_v63 = vmul.f32 %v1807_v60, %v752_v62 }
 0x5e4   :  { %v754_v0 = vmul.f32 0.5, %v753_v63 }
 0x5e6   :  { %v755_v1 = vsub.f32 1.5, %v754_v0 }
 0x5e7   :  { %v1809_v2 = vpop.eup %1808 }
 0x5e8   :  { %v756_v3 = vmul.f32 %v1807_v60, %v755_v1  ;;  %v762_v5 = vmul.f32 %v1809_v2, %v750_v61  ;;  %vm768_vm2 = vweird.f32 %v1809_v2 }
 0x5e9   :  { %vm769_vm4 = vmor %vm767_vm3, %vm768_vm2  ;;  %vm1601_vm2 = vcmask 8192  }
 0x5ea   :  { %v760_v10 = vsel %vm759_vm15, %v1807_v60, %v756_v3  ;;  %v763_v11 = vmul.f32 %v1809_v2, %v762_v5 }
 0x5eb   :  { %v771_v12 = vmul.f32 %v760_v10, %v737_v13 }
 0x5ec   :  { %v764_v17 = vmul.f32 0.5, %v763_v11 }
 0x5ed   :  { %v774_v18 = vmul.f32 %v773_v7, %v771_v12 }
 0x5ee   :  { %v765_v19 = vsub.f32 1.5, %v764_v17  ;;  %v1669_v17 = vld [vmem:[%s2515_s1 + $0xb8] sm:$0xff] }
 0x5ef   :  { %v777_v20 = vadd.f32 %v776_v15, %v774_v18  ;;  %v1674_v18 = vld [vmem:[%s2515_s1 + $0xe0] sm:$0xff]  ;;  %964 = vmatpush.msrb.mxu2 %v1669_v17 }
 0x5f0   :  { %v766_v21 = vmul.f32 %v1809_v2, %v765_v19  ;;  %v1679_v19 = vld [vmem:[%s2515_s1 + $0x108] sm:$0xff]  ;;  %987 = vmatpush.msrb.mxu3 %v1674_v18 }
 0x5f1   :  { %1663 = vmatmul.msk.f32.vlgmr.msra.gmra.mxu0 %vm30_vm1, %v777_v20  ;;  %v1668_v20 = vld [vmem:[%s2515_s1 + $0xb0] sm:$0xff] }
 0x5f2   :  { %v770_v22 = vsel %vm769_vm4, %v1809_v2, %v766_v21  ;;  %1010 = vmatpush.msrb.mxu0 %v1679_v19  ;;  %v1673_v21 = vld [vmem:[%s2515_s1 + $0xd8] sm:$0xff]  ;;  %965 = vmatpush.msrb.mxu2 %v1668_v20 }
 0x5f3   :  { %v772_v23 = vmul.f32 %v770_v22, %v738_v4  ;;  %v1678_v22 = vld [vmem:[%s2515_s1 + $0x100] sm:$0xff]  ;;  %988 = vmatpush.msrb.mxu3 %v1673_v21 }
 0x5f4   :  { %1011 = vmatpush.msrb.mxu0 %v1678_v22 }
 0x5f5   :  { %v775_v24 = vmul.f32 %v773_v7, %v772_v23  ;;  %v1667_v23 = vld [vmem:[%s2515_s1 + $0xa8] sm:$0xff] }
 0x5f6   :  { %966 = vmatpush.msrb.mxu2 %v1667_v23 }
 0x5f7   :  { %v778_v25 = vadd.f32 %v776_v15, %v775_v24  ;;  %v1672_v24 = vld [vmem:[%s2515_s1 + $0xd0] sm:$0xff] }
 0x5f8   :  { %989 = vmatpush.msrb.mxu3 %v1672_v24  ;;  %967 = vmatpush.msrb.mxu2 %v1666_v26 }
 0x5f9   :  { %1664 = vmatmul.msk.f32.gmra.mxu0 %vm30_vm1, %v778_v25  ;;  %v1677_v25 = vld [vmem:[%s2515_s1 + $0xf8] sm:$0xff] }
 0x5fa   :  { %1012 = vmatpush.msrb.mxu0 %v1677_v25  ;;  %990 = vmatpush.msrb.mxu3 %v1671_v27 }
 0x5fb   :  { %1033 = vmatpush.msra.mxu2 %v1684_v16 }
 0x5fc   :  { %1013 = vmatpush.msrb.mxu0 %v1676_v28 }
 0x5fd   :  { %1034 = vmatpush.msra.mxu2 %v1683_v33 }
 0x5ff   :  { %1035 = vmatpush.msra.mxu2 %v1682_v35 }
 0x601   :  { %1036 = vmatpush.msra.mxu2 %v1681_v37 }
 0x66e   :  { %v807_v8 = vpop.f32.mrf.mxu0 }
 0x66f   :  { %v808_v39 = vadd.f32 %v807_v8, %v783_v6 }
 0x671   :  { %v815_v9 = vmul.f32 0.044715, %v808_v39  ;;  %v813_v51 = vmul.f32 0.5, %v808_v39 }
 0x673   :  { %v817_v13 = vmul.f32 %v815_v9, %v808_v39 }
 0x675   :  { %v819_v40 = vmul.f32 %v817_v13, %v808_v39 }
 0x676   :  { %v810_v41 = vpop.f32.mrf.mxu0 }
 0x677   :  { %v811_v42 = vadd.f32 %v810_v41, %v783_v6  ;;  %v821_v43 = vadd.f32 %v819_v40, %v808_v39  ;;  %v2305_v40 = vld [vmem:[%s2518_s4 + $0x8] sm:$0xff] }
 0x679   :  { %v823_v4 = vmul.f32 0.7978846, %v821_v43  ;;  %v816_v44 = vmul.f32 0.044715, %v811_v42  ;;  %v814_v57 = vmul.f32 0.5, %v811_v42 }
 0x67b   :  { %1810 = vtanh.f32 %v823_v4  ;;  %v818_v45 = vmul.f32 %v816_v44, %v811_v42  ;;  %v940_v44 = vperm.slane %v2305_v40, 0 }
 0x67d   :  { %v820_v46 = vmul.f32 %v818_v45, %v811_v42 }
 0x67f   :  { %v822_v47 = vadd.f32 %v820_v46, %v811_v42 }
 0x681   :  { %v1811_v48 = vpop.eup %1810  ;;  %v824_v49 = vmul.f32 0.7978846, %v822_v47 }
 0x682   :  { %v827_v53 = vadd.f32 1.0, %v1811_v48  ;;  %v943_v48 = vperm.slane %v2305_v40, 1 }
 0x683   :  { %1812 = vtanh.f32 %v824_v49 }
 0x684   :  { %v829_v54 = vmul.f32 %v827_v53, %v813_v51 }
 0x686   :  { %864 = vmatmul.f32.vlgmr.msrb.gmra.mxu1 %v829_v54 }
 0x689   :  { %v1813_v56 = vpop.eup %1812 }
 0x68a   :  { %v828_v58 = vadd.f32 1.0, %v1813_v56 }
 0x68c   :  { %v830_v59 = vmul.f32 %v828_v58, %v814_v57 }
 0x68e   :  { %867 = vmatmul.f32.gmra.mxu1 %v830_v59 }
 0x703   :  { %v865_v55 = vpop.f32.mrf.mxu1 }
 0x704   :  { %v866_v60 = vadd.f32 %v865_v55, %v847_v50 }
 0x706   :  { %v2233_v61 = vadd.f32 %v866_v60, %v2147_v32 }
 0x708   :  { %v896_v62 = vsel %vm30_vm1, %v2233_v61, 0.0 }
 0x709   :  { %897 = vadd.xlane.f32.xlu2 %v896_v62 }
 0x70b   :  { %v868_v63 = vpop.f32.mrf.mxu1 }
 0x70c   :  { %v869_v0 = vadd.f32 %v868_v63, %v847_v50 }
 0x70e   :  { %v872_v1 = vadd.f32 %v869_v0, %v2154_v38 }
 0x710   :  { %v899_v2 = vsel %vm25_vm0, %v872_v1, 0.0 }
 0x711   :  { %900 = vadd.xlane.f32.xlu1 %v899_v2 }
 0x77c   :  { %v898_v3 = vpop.xlane.xlu2 %897 }
 0x77d   :  { %v902_v5 = vmul.f32 %v898_v3, %v1924_v14 }
 0x77f   :  { %v2241_v52 = vsub.f32 %v2233_v61, %v902_v5 }
 0x781   :  { %v906_v32 = vmul.f32 %v2241_v52, %v2241_v52 }
 0x783   :  { %v908_v7 = vsel %vm30_vm1, %v906_v32, 0.0 }
 0x784   :  { %v901_v10 = vpop.xlane.xlu1 %900  ;;  %909 = vadd.xlane.f32.xlu2 %v908_v7 }
 0x785   :  { %v903_v11 = vmul.f32 %v901_v10, %v1924_v14 }
 0x787   :  { %v2247_v12 = vsub.f32 %v872_v1, %v903_v11 }
 0x789   :  { %v907_v38 = vmul.f32 %v2247_v12, %v2247_v12 }
 0x78b   :  { %v911_v15 = vsel %vm25_vm0, %v907_v38, 0.0 }
 0x78c   :  { %912 = vadd.xlane.f32.xlu1 %v911_v15 }
 0x7f7   :  { %v910_v29 = vpop.xlane.xlu2 %909 }
 0x7f8   :  { %v914_v30 = vmul.f32 %v910_v29, %v1924_v14 }
 0x7fa   :  { %v916_v31 = vadd.f32 1e-05, %v914_v30 }
 0x7fc   :  { %1814 = vrsqrt.f32 %v916_v31  ;;  %vm924_vm6 = vweird.f32 %v916_v31 }
 0x7ff   :  { %v913_v34 = vpop.xlane.xlu1 %912 }
 0x800   :  { %v915_v36 = vmul.f32 %v913_v34, %v1924_v14 }
 0x802   :  { %v1815_v6 = vpop.eup %1814  ;;  %v917_v8 = vadd.f32 1e-05, %v915_v36 }
 0x803   :  { %v919_v39 = vmul.f32 %v1815_v6, %v916_v31  ;;  %vm925_vm5 = vweird.f32 %v1815_v6 }
 0x804   :  { %1816 = vrsqrt.f32 %v917_v8  ;;  %vm926_vm7 = vmor %vm924_vm6, %vm925_vm5  ;;  %vm934_vm13 = vweird.f32 %v917_v8 }
 0x805   :  { %v920_v9 = vmul.f32 %v1815_v6, %v919_v39 }
 0x807   :  { %v921_v13 = vmul.f32 0.5, %v920_v9 }
 0x809   :  { %v922_v41 = vsub.f32 1.5, %v921_v13 }
 0x80a   :  { %v1817_v42 = vpop.eup %1816 }
 0x80b   :  { %v923_v43 = vmul.f32 %v1815_v6, %v922_v41  ;;  %v929_v4 = vmul.f32 %v1817_v42, %v917_v8  ;;  %vm935_vm8 = vweird.f32 %v1817_v42 }
 0x80c   :  { %vm936_vm14 = vmor %vm934_vm13, %vm935_vm8 }
 0x80d   :  { %v927_v45 = vsel %vm926_vm7, %v1815_v6, %v923_v43  ;;  %v930_v46 = vmul.f32 %v1817_v42, %v929_v4 }
 0x80e   :  { %v938_v47 = vmul.f32 %v927_v45, %v2241_v52 }
 0x80f   :  { %v931_v49 = vmul.f32 0.5, %v930_v46 }
 0x810   :  { %v941_v51 = vmul.f32 %v940_v44, %v938_v47 }
 0x811   :  { %v932_v53 = vsub.f32 1.5, %v931_v49 }
 0x812   :  { %v944_v54 = vadd.f32 %v943_v48, %v941_v51 }
 0x813   :  { %v933_v56 = vmul.f32 %v1817_v42, %v932_v53 }
 0x814   :  { %1686 = vmatmul.msk.f32.vlgmr.msrb.gmra.mxu2 %vm30_vm1, %v944_v54  ;;  %1688 = vmatmul.msk.f32.vlgmr.msrb.gmra.mxu3 %vm30_vm1, %v944_v54 }
 0x815   :  { %v937_v57 = vsel %vm936_vm14, %v1817_v42, %v933_v56  ;;  %1690 = vmatmul.msk.f32.vlgmr.msrb.gmra.mxu0 %vm30_vm1, %v944_v54 }
 0x816   :  { %v939_v58 = vmul.f32 %v937_v57, %v2247_v12 }
 0x818   :  { %v942_v59 = vmul.f32 %v940_v44, %v939_v58 }
 0x81a   :  { %v945_v50 = vadd.f32 %v943_v48, %v942_v59 }
 0x81c   :  { %1687 = vmatmul.msk.f32.gmra.mxu2 %vm30_vm1, %v945_v50  ;;  %1689 = vmatmul.msk.f32.gmra.mxu3 %vm30_vm1, %v945_v50 }
 0x81d   :  { %1691 = vmatmul.msk.f32.gmra.mxu0 %vm30_vm1, %v945_v50 }
 0x824   :  { %1692 = vmatmul.msk.f32.vlgmr.msra.gmra.mxu2 %vm30_vm1, %v944_v54 }
 0x82c   :  { %1693 = vmatmul.msk.f32.gmra.mxu2 %vm30_vm1, %v945_v50 }
 0x892   :  { %v2319_v55 = vpop.f32.mrf.mxu0 }
 0x897   :  { %v2321_v60 = vpop.f32.mrf.mxu2  ;;  %v2323_v62 = vpop.f32.mrf.mxu3 }
 0x898   :  { %1046 = vrot.lane.b32.xlu2 %v2321_v60, %s1867_s11  ;;  %v1758_v13 = vpack.i.bf16 %v2323_v62, %v2321_v60 }
 0x89a   :  { %v2327_v63 = vpop.f32.mrf.mxu0 }
 0x89f   :  { %v972_v0 = vpop.f32.mrf.mxu2  ;;  %v995_v1 = vpop.f32.mrf.mxu3 }
 0x8a0   :  { %1080 = vrot.lane.b32.xlu1 %v995_v1, %s1867_s11  ;;  %1112 = vrot.lane.b32.xlu2 %v2327_v63, %s1867_s11 }
 0x8a1   :  { %1048 = vrot.lane.b32.xlu0 %v972_v0, %s1867_s11 }
 0x8a7   :  { %v2333_v2 = vpop.f32.mrf.mxu2 }
 0x8a8   :  { %1110 = vrot.lane.b32.xlu1 %v2319_v55, %s1867_s11  ;;  %1142 = vrot.lane.b32.xlu2 %v2333_v2, %s1867_s11  ;;  %v1763_v41 = vpack.i.bf16 %v2333_v2, %v2319_v55 }
 0x8a9   :  { %1078 = vrot.lane.b32.xlu0 %v2323_v62, %s1867_s11 }
 0x8af   :  { %v2341_v3 = vpop.f32.mrf.mxu2 }
 0x8b1   :  { %1144 = vrot.lane.b32.xlu0 %v2341_v3, %s1867_s11 }
 0x8f2   :  { %v1047_v5 = vpop.permute.xlu2 %1046 }
 0x8fa   :  { %v1113_v52 = vpop.permute.xlu2 %1112 }
 0x8fb   :  { %1700 = vmatpush.xpose.msk.msra.mxu0 %vm216_vm9, %v1113_v52  ;;  %v1680_v52 = vld [vmem:[%s2515_s1 + $0x110] sm:$0xff] }
 0x902   :  { %v1143_v38 = vpop.permute.xlu2 %1142 }
 0x912   :  { %v1081_v32 = vpop.permute.xlu1 %1080 }
 0x913   :  { %v1049_v7 = vpop.permute.xlu0 %1048 }
 0x914   :  { %1694 = vmatpush.xpose.msk.msra.mxu3 %vm216_vm9, %v1049_v7 }
 0x918   :  { %1695 = vmatpush.xpose.msk.msra.mxu3 %vm216_vm9, %v1047_v5  ;;  %v1675_v5 = vld [vmem:[%s2515_s1 + $0xe8] sm:$0xff] }
 0x91a   :  { %v1111_v10 = vpop.permute.xlu1 %1110 }
 0x91b   :  { %1696 = vmatmul.msk.f32.vlgmr.msra.gmra.mxu3 %vm216_vm9, %v2321_v60  ;;  %v1079_v11 = vpop.permute.xlu0 %1078  ;;  %1701 = vmatpush.xpose.msk.msra.mxu0 %vm216_vm9, %v1111_v10 }
 0x91c   :  { %1697 = vmatpush.xpose.msk.msrb.mxu3 %vm216_vm9, %v1081_v32 }
 0x91e   :  { %1702 = vmatmul.msk.f32.vlgmr.msra.gmra.mxu0 %vm216_vm9, %v2319_v55 }
 0x920   :  { %1698 = vmatpush.xpose.msk.msrb.mxu3 %vm216_vm9, %v1079_v11  ;;  %v1685_v11 = vld [vmem:[%s2515_s1 + $0x138] sm:$0xff] }
 0x923   :  { %1699 = vmatmul.msk.f32.vlgmr.msrb.gmra.mxu3 %vm216_vm9, %v2323_v62  ;;  %v1145_v12 = vpop.permute.xlu0 %1144 }
 0x924   :  { %1703 = vmatpush.xpose.msk.msra.mxu1 %vm216_vm9, %v1145_v12 }
 0x928   :  { %1704 = vmatpush.xpose.msk.msra.mxu1 %vm216_vm9, %v1143_v38 }
 0x92b   :  { %1705 = vmatmul.msk.f32.vlgmr.msra.gmra.mxu1 %vm216_vm9, %v2333_v2 }
 0x99b   :  { %v1137_v15 = vpop.f32.mrf.mxu0 }
 0x99c   :  { %v1178_v17 = vsel %vm363_vm12, %v1137_v15, -inf }
 0x99d   :  { %1179 = vmax.xlane.f32.xlu2 %v1178_v17 }
 0x99e   :  { %v1073_v18 = vpop.f32.mrf.mxu3 }
 0x99f   :  { %v1172_v19 = vsel %vm363_vm12, %v1073_v18, -inf }
 0x9a0   :  { %1173 = vmax.xlane.f32.xlu0 %v1172_v19 }
 0x9a6   :  { %v1105_v20 = vpop.f32.mrf.mxu3 }
 0x9a7   :  { %v1175_v21 = vsel %vm363_vm12, %v1105_v20, -inf }
 0x9a8   :  { %1176 = vmax.xlane.f32.xlu1 %v1175_v21  ;;  %v1169_v22 = vpop.f32.mrf.mxu1 }
 0x9a9   :  { %v1181_v23 = vsel %vm363_vm12, %v1169_v22, -inf }
 0x9aa   :  { %1182 = vmax.xlane.f32.xlu0 %v1181_v23 }
 0x9be   :  { %1218 = vrot.lane.b32.xlu0 %v972_v0, %s1868_s12 }
 0x9c1   :  { %1248 = vrot.lane.b32.xlu1 %v995_v1, %s1868_s12 }
 0xa10   :  { %v1180_v24 = vpop.xlane.xlu2 %1179 }
 0xa11   :  { %v1186_v25 = vsub.f32 %v1137_v15, %v1180_v24 }
 0xa13   :  { %v1192_v26 = vmul.f32 1.442695, %v1186_v25  ;;  %v1174_v27 = vpop.xlane.xlu0 %1173 }
 0xa14   :  { %v1184_v28 = vsub.f32 %v1073_v18, %v1174_v27 }
 0xa15   :  { %1818 = vpow2.f32 %v1192_v26  ;;  %v1437_v26 = vrot.slane %v2305_v40, 4 }
 0xa16   :  { %v1188_v29 = vmul.f32 1.442695, %v1184_v28 }
 0xa18   :  { %1820 = vpow2.f32 %v1188_v29 }
 0xa1b   :  { %v1819_v30 = vpop.eup %1818  ;;  %v1177_v31 = vpop.xlane.xlu1 %1176 }
 0xa1c   :  { %v1185_v16 = vsub.f32 %v1105_v20, %v1177_v31  ;;  %v1202_v33 = vsel %vm363_vm12, %v1819_v30, 0.0 }
 0xa1d   :  { %1203 = vadd.xlane.f32.xlu0 %v1202_v33  ;;  %v1183_v8 = vpop.xlane.xlu0 %1182 }
 0xa1e   :  { %v1821_v34 = vpop.eup %1820  ;;  %v1190_v35 = vmul.f32 1.442695, %v1185_v16  ;;  %v1187_v42 = vsub.f32 %v1169_v22, %v1183_v8  ;;  %v1737_v8 = vld [vmem:[%s2517_s3 + $0xf0] sm:$0xff] }
 0xa1f   :  { %v1196_v36 = vsel %vm363_vm12, %v1821_v34, 0.0 }
 0xa20   :  { %1822 = vpow2.f32 %v1190_v35  ;;  %1197 = vadd.xlane.f32.xlu1 %v1196_v36  ;;  %v1194_v43 = vmul.f32 1.442695, %v1187_v42  ;;  %v1721_v35 = vld [vmem:[%s2516_s2 + $0x38] sm:$0xff]  ;;  %v1719_v36 = vld [vmem:[%s2516_s2 + $0x28] sm:$0xff] }
 0xa22   :  { %1824 = vpow2.f32 %v1194_v43 }
 0xa26   :  { %v1823_v37 = vpop.eup %1822 }
 0xa27   :  { %v1199_v6 = vsel %vm363_vm12, %v1823_v37, 0.0 }
 0xa28   :  { %1200 = vadd.xlane.f32.xlu2 %v1199_v6  ;;  %v1825_v4 = vpop.eup %1824  ;;  %v1738_v6 = vld [vmem:[%s2517_s3 + $0xf8] sm:$0xff] }
 0xa29   :  { %v1205_v44 = vsel %vm363_vm12, %v1825_v4, 0.0 }
 0xa30   :  { %v1219_v39 = vpop.permute.xlu0 %1218 }
 0xa31   :  { %1706 = vmatpush.msk.msrb.mxu2 %vm460_vm10, %v1219_v39  ;;  %v1736_v39 = vld [vmem:[%s2517_s3 + $0xe8] sm:$0xff] }
 0xa33   :  { %v1249_v9 = vpop.permute.xlu1 %1248 }
 0xa34   :  { %1708 = vmatpush.msk.msra.mxu3 %vm460_vm10, %v1249_v9 }
 0xa39   :  { %1278 = vrot.lane.b32.xlu1 %v2327_v63, %s1868_s12 }
 0xa40   :  { %1759 = vrot.lane.b32.xlu2 %v1758_v13, %s1868_s12 }
 0xa41   :  { %1764 = vrot.lane.b32.xlu1 %v1763_v41, %s1868_s12  ;;  %v1735_v41 = vld [vmem:[%s2517_s3 + $0xe0] sm:$0xff] }
 0xa49   :  { %1308 = vrot.lane.b32.xlu1 %v2341_v3, %s1868_s12  ;;  %v1670_v3 = vld [vmem:[%s2515_s1 + $0xc0] sm:$0xff] }
 0xa69   :  { %1206 = vadd.xlane.f32.xlu2 %v1205_v44 }
 0xa90   :  { %v1204_v57 = vpop.xlane.xlu0 %1203 }
 0xa93   :  { %v1198_v45 = vpop.xlane.xlu1 %1197 }
 0xa94   :  { %1826 = vrcp.f32 %v1198_v45 }
 0xa9a   :  { %v1827_v47 = vpop.eup %1826 }
 0xa9b   :  { %v1201_v46 = vpop.xlane.xlu2 %1200  ;;  %v1212_v54 = vmul.f32 %v1827_v47, %v1821_v34 }
 0xa9c   :  { %1828 = vrcp.f32 %v1201_v46 }
 0xa9d   :  { %1830 = vrcp.f32 %v1204_v57  ;;  %v1734_v57 = vld [vmem:[%s2517_s3 + $0xd8] sm:$0xff] }
 0xaa2   :  { %v1829_v48 = vpop.eup %1828 }
 0xaa3   :  { %v1760_v49 = vpop.permute.xlu2 %1759  ;;  %v1213_v56 = vmul.f32 %v1829_v48, %v1823_v37  ;;  %v1831_v59 = vpop.eup %1830  ;;  %v1718_v37 = vld [vmem:[%s2516_s2 + $0x20] sm:$0xff]  ;;  %v1462_v48 = vrot.slane %v2305_v40, 2 }
 0xaa4   :  { %v1762_v51 = vunpack.i.h.bf16 %v1760_v49  ;;  %v1761_v53 = vunpack.i.l.bf16 %v1760_v49  ;;  %v1214_v60 = vmul.f32 %v1831_v59, %v1819_v30  ;;  %v1732_v59 = vld [vmem:[%s2517_s3 + $0xc8] sm:$0xff] }
 0xaa6   :  { %1241 = vmatpush.msrb.mxu2 %v1761_v53  ;;  %1271 = vmatpush.msra.mxu3 %v1762_v51  ;;  %v1465_v53 = vrot.slane %v2305_v40, 3 }
 0xaa7   :  { %1707 = vmatmul.msk.f32.vlgmr.msrb.gmra.mxu2 %vm359_vm11, %v1212_v54  ;;  %1709 = vmatmul.msk.f32.vlgmr.msra.gmra.mxu3 %vm359_vm11, %v1213_v56 }
 0xaa8   :  { %1354 = vmatpush.msra.mxu2 %v1670_v3  ;;  %1377 = vmatpush.msrb.mxu3 %v1675_v5  ;;  %v1723_v3 = vld [vmem:[%s2517_s3 + $0x80] sm:$0xff]  ;;  %v1473_v5 = vrot.slane %v2305_v40, 6 }
 0xaaa   :  { %1490 = vmatpush.msrb.mxu2 %v1721_v35  ;;  %1526 = vmatpush.msra.mxu3 %v1738_v6 }
 0xaab   :  { %v1279_v58 = vpop.permute.xlu1 %1278 }
 0xaac   :  { %1710 = vmatpush.msk.msrb.mxu0 %vm460_vm10, %v1279_v58  ;;  %1527 = vmatpush.msra.mxu3 %v1737_v8  ;;  %v1733_v58 = vld [vmem:[%s2517_s3 + $0xd0] sm:$0xff] }
 0xaae   :  { %1528 = vmatpush.msra.mxu3 %v1736_v39 }
 0xab0   :  { %1529 = vmatpush.msra.mxu3 %v1735_v41 }
 0xab2   :  { %1530 = vmatpush.msra.mxu3 %v1734_v57 }
 0xab3   :  { %v1765_v50 = vpop.permute.xlu1 %1764 }
 0xab4   :  { %v1766_v55 = vunpack.i.l.bf16 %v1765_v50  ;;  %v1767_v63 = vunpack.i.h.bf16 %v1765_v50  ;;  %1531 = vmatpush.msra.mxu3 %v1733_v58  ;;  %v1731_v50 = vld [vmem:[%s2517_s3 + $0xc0] sm:$0xff] }
 0xab6   :  { %1301 = vmatpush.msrb.mxu0 %v1766_v55  ;;  %1532 = vmatpush.msra.mxu3 %v1732_v59  ;;  %v1730_v55 = vld [vmem:[%s2517_s3 + $0xb8] sm:$0xff] }
 0xab7   :  { %1711 = vmatmul.msk.f32.vlgmr.msrb.gmra.mxu0 %vm359_vm11, %v1214_v60  ;;  %v1729_v60 = vld [vmem:[%s2517_s3 + $0xb0] sm:$0xff] }
 0xab8   :  { %1400 = vmatpush.msra.mxu0 %v1680_v52  ;;  %1533 = vmatpush.msra.mxu3 %v1731_v50 }
 0xaba   :  { %1534 = vmatpush.msra.mxu3 %v1730_v55 }
 0xabb   :  { %v1309_v62 = vpop.permute.xlu1 %1308 }
 0xabc   :  { %1712 = vmatpush.msk.msrb.mxu1 %vm460_vm10, %v1309_v62  ;;  %v1728_v62 = vld [vmem:[%s2517_s3 + $0xa8] sm:$0xff]  ;;  %1535 = vmatpush.msra.mxu3 %v1729_v60 }
 0xabe   :  { %1331 = vmatpush.msrb.mxu1 %v1767_v63  ;;  %v1727_v63 = vld [vmem:[%s2517_s3 + $0xa0] sm:$0xff]  ;;  %1536 = vmatpush.msra.mxu3 %v1728_v62 }
 0xac0   :  { %1423 = vmatpush.msra.mxu1 %v1685_v11  ;;  %1537 = vmatpush.msra.mxu3 %v1727_v63 }
 0xadc   :  { %v1207_v0 = vpop.xlane.xlu2 %1206 }
 0xadd   :  { %1832 = vrcp.f32 %v1207_v0  ;;  %v1726_v0 = vld [vmem:[%s2517_s3 + $0x98] sm:$0xff] }
 0xade   :  { %1538 = vmatpush.msra.mxu3 %v1726_v0 }
 0xae3   :  { %v1833_v1 = vpop.eup %1832 }
 0xae4   :  { %v1215_v2 = vmul.f32 %v1833_v1, %v1825_v4  ;;  %v1725_v1 = vld [vmem:[%s2517_s3 + $0x90] sm:$0xff] }
 0xae5   :  { %1539 = vmatpush.msra.mxu3 %v1725_v1 }
 0xae6   :  { %1713 = vmatmul.msk.f32.vlgmr.msrb.gmra.mxu1 %vm359_vm11, %v1215_v2  ;;  %v1724_v2 = vld [vmem:[%s2517_s3 + $0x88] sm:$0xff] }
 0xae7   :  { %1540 = vmatpush.msra.mxu3 %v1724_v2 }
 0xae9   :  { %1541 = vmatpush.msra.mxu3 %v1723_v3 }
 0xb2a   :  { %v1243_v32 = vpop.f32.mrf.mxu2  ;;  %v1273_v7 = vpop.f32.mrf.mxu3 }
 0xb2b   :  { %1714 = vmatmul.msk.f32.vlgmr.msra.gmra.mxu2 %vm216_vm9, %v1243_v32  ;;  %1715 = vmatmul.msk.f32.vlgmr.msrb.gmra.mxu3 %vm216_vm9, %v1273_v7 }
 0xb34   :  { %v1303_v10 = vpop.f32.mrf.mxu0 }
 0xb35   :  { %1716 = vmatmul.msk.f32.vlgmr.msra.gmra.mxu0 %vm216_vm9, %v1303_v10 }
 0xb63   :  { %v1333_v12 = vpop.f32.mrf.mxu1 }
 0xb64   :  { %1717 = vmatmul.msk.f32.vlgmr.msra.gmra.mxu1 %vm216_vm9, %v1333_v12 }
 0xbae   :  { %v1356_v38 = vpop.f32.mrf.mxu2  ;;  %v1379_v15 = vpop.f32.mrf.mxu3 }
 0xbaf   :  { %v1428_v18 = vsel %vm25_vm0, %v1356_v38, 0.0  ;;  %v1429_v19 = vsel %vm25_vm0, %v1379_v15, 0.0 }
 0xbb0   :  { %v1430_v21 = vadd.f32 %v1429_v19, %v1428_v18 }
 0xbb2   :  { %v1402_v17 = vpop.f32.mrf.mxu0 }
 0xbb3   :  { %v1431_v20 = vsel %vm25_vm0, %v1402_v17, 0.0 }
 0xbb4   :  { %v1432_v22 = vadd.f32 %v1431_v20, %v1430_v21  ;;  %v1524_v20 = vrot.slane %v2305_v40, 5  ;;  %v1551_v40 = vld [vmem:[%s2519_s5 + $0x19] sm:$0xff] }
 0xbe1   :  { %v1425_v23 = vpop.f32.mrf.mxu1 }
 0xbe2   :  { %v1433_v24 = vsel %vm25_vm0, %v1425_v23, 0.0 }
 0xbe3   :  { %v1434_v25 = vadd.f32 %v1433_v24, %v1432_v22 }
 0xbe5   :  { %v1435_v27 = vadd.f32 %v1434_v25, %v2233_v61  ;;  %v1720_v61 = vld [vmem:[%s2516_s2 + $0x30] sm:$0xff] }
 0xbe6   :  { %1491 = vmatpush.msrb.mxu2 %v1720_v61 }
 0xbe7   :  { %v2411_v28 = vadd.f32 %v1437_v26, %v1435_v27 }
 0xbe8   :  { %1492 = vmatpush.msrb.mxu2 %v1719_v36 }
 0xbe9   :  { %v1440_v29 = vsel %vm25_vm0, %v2411_v28, 0.0 }
 0xbea   :  { %1441 = vadd.xlane.f32.xlu1 %v1440_v29  ;;  %1493 = vmatpush.msrb.mxu2 %v1718_v37 }
 0xc5d   :  { %v1442_v30 = vpop.xlane.xlu1 %1441 }
 0xc5e   :  { %v1443_v31 = vmul.f32 %v1442_v30, %v1924_v14 }
 0xc60   :  { %v1444_v16 = vsub.f32 %v2411_v28, %v1443_v31  ;;  %v1552_v31 = vld [vmem:[%s2519_s5 + $0x21] sm:$0xff] }
 0xc61   :  { %1593 = vmatpush.msrb.mxu0 %v1552_v31 }
 0xc62   :  { %v1445_v33 = vmul.f32 %v1444_v16, %v1444_v16 }
 0xc63   :  { %1594 = vmatpush.msrb.mxu0 %v1551_v40 }
 0xc64   :  { %v1446_v34 = vsel %vm25_vm0, %v1445_v33, 0.0 }
 0xc65   :  { %1447 = vadd.xlane.f32.xlu0 %v1446_v34 }
 0xcd8   :  { %v1448_v9 = vpop.xlane.xlu0 %1447 }
 0xcd9   :  { %v1449_v13 = vmul.f32 %v1448_v9, %v1924_v14  ;;  %v1547_v9 = vld [vmem:[%s2519_s5 + $0x29] sm:$0x1] }
 0xcdb   :  { %v1450_v42 = vadd.f32 1e-05, %v1449_v13 }
 0xcdd   :  { %1834 = vrsqrt.f32 %v1450_v42  ;;  %vm1457_vm10 = vweird.f32 %v1450_v42 }
 0xce3   :  { %v1835_v43 = vpop.eup %1834 }
 0xce4   :  { %v1452_v4 = vmul.f32 %v1835_v43, %v1450_v42  ;;  %vm1458_vm9 = vweird.f32 %v1835_v43 }
 0xce5   :  { %vm1459_vm11 = vmor %vm1457_vm10, %vm1458_vm9 }
 0xce6   :  { %v1453_v44 = vmul.f32 %v1835_v43, %v1452_v4  ;;  %v1553_v4 = vld [vmem:[%s2519_s5 + $0x2b] sm:$0x1] }
 0xce8   :  { %v1454_v45 = vmul.f32 0.5, %v1453_v44 }
 0xcea   :  { %v1455_v46 = vsub.f32 1.5, %v1454_v45 }
 0xcec   :  { %v1456_v47 = vmul.f32 %v1835_v43, %v1455_v46 }
 0xcee   :  { %v1460_v49 = vsel %vm1459_vm11, %v1835_v43, %v1456_v47 }
 0xcef   :  { %v1461_v51 = vmul.f32 %v1460_v49, %v1444_v16  ;;  %v1549_v16 = vld [vmem:[%s2519_s5 + $0x9] sm:$0xff] }
 0xcf1   :  { %v1464_v54 = vmul.f32 %v1462_v48, %v1461_v51 }
 0xcf3   :  { %v1467_v56 = vadd.f32 %v1465_v53, %v1464_v54 }
 0xcf5   :  { %1722 = vmatmul.msk.f32.vlgmr.msrb.gmra.mxu2 %vm30_vm1, %v1467_v56 }
 0xd78   :  { %v1495_v52 = vpop.f32.mrf.mxu2 }
 0xd79   :  { %v1496_v32 = vadd.f32 %v1495_v52, %v1473_v5 }
 0xd7b   :  { %v1499_v7 = vmul.f32 0.044715, %v1496_v32  ;;  %v1498_v17 = vmul.f32 0.5, %v1496_v32 }
 0xd7d   :  { %v1500_v10 = vmul.f32 %v1499_v7, %v1496_v32 }
 0xd7f   :  { %v1501_v11 = vmul.f32 %v1500_v10, %v1496_v32 }
 0xd81   :  { %v1502_v12 = vadd.f32 %v1501_v11, %v1496_v32 }
 0xd83   :  { %v1503_v38 = vmul.f32 0.7978846, %v1502_v12 }
 0xd85   :  { %1836 = vtanh.f32 %v1503_v38 }
 0xd8b   :  { %v1837_v15 = vpop.eup %1836 }
 0xd8c   :  { %v1505_v18 = vadd.f32 1.0, %v1837_v15 }
 0xd8e   :  { %v1506_v19 = vmul.f32 %v1505_v18, %v1498_v17 }
 0xd90   :  { %1542 = vmatmul.f32.vlgmr.msra.gmra.mxu3 %v1506_v19 }
 0xe13   :  { %v1543_v21 = vpop.f32.mrf.mxu3 }
 0xe14   :  { %v1544_v22 = vadd.f32 %v1543_v21, %v1524_v20 }
 0xe16   :  { %v1546_v23 = vadd.f32 %v1544_v22, %v2411_v28  ;;  %v1550_v28 = vld [vmem:[%s2519_s5 + $0x11] sm:$0xff] }
 0xe17   :  { %1595 = vmatpush.msrb.mxu0 %v1550_v28 }
 0xe18   :  { %v1554_v24 = vsel %vm25_vm0, %v1546_v23, 0.0 }
 0xe19   :  { %1555 = vadd.xlane.f32.xlu2 %v1554_v24  ;;  %1596 = vmatpush.msrb.mxu0 %v1549_v16 }
 0xe8c   :  { %v1556_v25 = vpop.xlane.xlu2 %1555 }
 0xe8d   :  { %v1557_v26 = vmul.f32 %v1556_v25, %v1924_v14 }
 0xe8f   :  { %v1558_v27 = vsub.f32 %v1546_v23, %v1557_v26 }
 0xe91   :  { %v1559_v29 = vmul.f32 %v1558_v27, %v1558_v27 }
 0xe93   :  { %v1560_v30 = vsel %vm25_vm0, %v1559_v29, 0.0 }
 0xe94   :  { %1561 = vadd.xlane.f32.xlu0 %v1560_v30 }
 0xf07   :  { %v1562_v33 = vpop.xlane.xlu0 %1561 }
 0xf08   :  { %v1563_v34 = vmul.f32 %v1562_v33, %v1924_v14  ;;  %v1548_v14 = vld [vmem:[%s2519_s5 + $0x2a] sm:$0x1] }
 0xf0a   :  { %v1564_v35 = vadd.f32 1e-05, %v1563_v34 }
 0xf0c   :  { %1838 = vrsqrt.f32 %v1564_v35  ;;  %vm1571_vm12 = vweird.f32 %v1564_v35 }
 0xf12   :  { %v1839_v61 = vpop.eup %1838 }
 0xf13   :  { %v1566_v36 = vmul.f32 %v1839_v61, %v1564_v35  ;;  %vm1572_vm0 = vweird.f32 %v1839_v61 }
 0xf14   :  { %vm1573_vm15 = vmor %vm1571_vm12, %vm1572_vm0 }
 0xf15   :  { %v1567_v37 = vmul.f32 %v1839_v61, %v1566_v36 }
 0xf17   :  { %v1568_v6 = vmul.f32 0.5, %v1567_v37 }
 0xf19   :  { %v1569_v8 = vsub.f32 1.5, %v1568_v6 }
 0xf1b   :  { %v1570_v39 = vmul.f32 %v1839_v61, %v1569_v8 }
 0xf1d   :  { %v1574_v13 = vsel %vm1573_vm15, %v1839_v61, %v1570_v39 }
 0xf1e   :  { %v1575_v41 = vmul.f32 %v1574_v13, %v1558_v27 }
 0xf20   :  { %v1576_v42 = vmul.f32 %v1575_v41, %v1547_v9 }
 0xf22   :  { %v1577_v43 = vadd.f32 %v1576_v42, %v1548_v14 }
 0xf24   :  { %1739 = vmatmul.msk.f32.vlgmr.msrb.gmra.mxu0 %vm30_vm1, %v1577_v43 }
 0xfa1   :  { %v1598_v44 = vpop.f32.mrf.mxu0 }
 0xfa2   :  { %v1599_v45 = vadd.f32 %v1598_v44, %v1553_v4 }
 0xfa4   :  { %1602 = vst.msk [vmem:[#allocation3] sm:$0x1] %vm1601_vm2, %v1599_v45 }
 0xfa5   :  { %1613 = dma.vmem_to_hbm [thread:$0]  %s1609_s28, 16, %s1611_s30, [#allocation4]  }
 0xfa6   :  { %1864 = dma.done.wait [#allocation4], 16  }
 0xfa7   :  { %1865 = vsyncadd [#allocation4], 4294967280 }
 0xfa8   :  { %1618 = vsyncpa [#allocation4], 1 }

</bundles_post_ra>
